<compile_context>
chip_gen: v7x
topology: tpu7x:2x2x1
jax: 0.10.0
libtpu: 0.0.40
codegen_flags: <defaults>
</compile_context>

<pallas_src>
import functools

import jax
import jax.numpy as jnp
from jax.experimental import pallas as pl
from jax.experimental.pallas import tpu as pltpu


def _round_up(x, m):
    return ((x + m - 1) // m) * m


def _pick_band(H, W, hidden, budget=9 << 20, cap=256):
    """Pick the band height `th` (image rows per grid step).

    Constraints: per-step VMEM estimate under `budget`; when more than one band
    is used the output block's last dim (th*W) must be a multiple of 128;
    otherwise bigger is better (per-grid-step overhead ~0.35 us).
    """
    Wx = W + 4

    def est(th):
        A_pad = _round_up((th + 4) * Wx + 2, 128)
        Ah = (th + 2) * Wx
        Ah_pad = _round_up(Ah + 2, 128)
        return (8 * A_pad * 4 * 2          # x block (3->8 sublanes, double-buffered)
                + 8 * Ah * 4 * 2           # mask block
                + 3 * 8 * th * W * 4 * 2   # three (3->8 sublane) output blocks
                + hidden * Ah_pad * 4      # h1 VMEM scratch
                + 4 * hidden * Ah * 4)     # matmul operand / accumulator transients

    best = None
    for th in range(8, min(cap, max(H - 1, 8)) + 1, 8):
        if th < H and (th * W) % 128 == 0 and est(th) <= budget:
            best = th
    if est(H) <= budget and (best is None or H > best):
        best = H                           # whole image as a single band
    if best is None:                       # fallback: smallest legal banded tile
        th = 8
        while (th * W) % 128 != 0 and th < H:
            th += 8
        best = th if (th < H and (th * W) % 128 == 0) else H
    nb = -(-H // best)
    return best, nb


def _wdnet_kernel(x_ref, m_ref, w1_ref, b1_ref, w2_ref, b2_ref, wh_ref, bh_ref,
                  g_ref, gm_ref, bl_ref, h1_ref, *, th, W, hidden):
    """Whole WDNet forward for one (row-band, image) grid step.

    Activations are flat channel-major slabs (channels on sublanes, pixels on
    lanes) over a (rows, W+4)-wide grid; the 3x3 taps of both convs are
    contiguous lane-offset slices of those slabs, so no im2col is materialized
    in HBM or VMEM.
    """
    Wx = W + 4
    Ah = (th + 2) * Wx            # h1 grid: th + 2 rows (1-row halo each side)
    Ao = th * Wx                  # output grid: th rows
    Ah_pad = h1_ref.shape[1]

    # ---- conv1 (3x3, pad 1) + ReLU on the halo grid --------------------------
    acc = jnp.dot(w1_ref[0], x_ref[:, 0:Ah], preferred_element_type=jnp.float32)
    for t in range(1, 9):
        dy, dx = divmod(t, 3)
        s = dy * Wx + dx
        acc = acc + jnp.dot(w1_ref[t], x_ref[:, s:s + Ah],
                            preferred_element_type=jnp.float32)
    # mask zeroes (a) the ring that implements conv2's zero padding and
    # (b) halo rows that fall outside the image (band / image boundaries).
    h1 = jnp.maximum(acc + b1_ref[...], 0.0) * m_ref[...]
    h1_ref[:, 0:Ah] = h1
    h1_ref[:, Ah:Ah_pad] = jnp.zeros((hidden, Ah_pad - Ah), jnp.float32)

    # ---- conv2 (3x3, pad 1) + ReLU on the output grid -------------------------
    acc2 = jnp.dot(w2_ref[0], h1_ref[:, 0:Ao], preferred_element_type=jnp.float32)
    for t in range(1, 9):
        dy, dx = divmod(t, 3)
        s = dy * Wx + dx
        acc2 = acc2 + jnp.dot(w2_ref[t], h1_ref[:, s:s + Ao],
                              preferred_element_type=jnp.float32)
    h2 = jnp.maximum(acc2 + b2_ref[...], 0.0)                       # (hidden, Ao)

    # ---- three sigmoid 1x1 heads (mask / alpha / w), one packed matmul --------
    hh = jnp.dot(wh_ref[...], h2, preferred_element_type=jnp.float32) + bh_ref[...]
    hh = pl.reciprocal(1.0 + jnp.exp(-hh), approx=True)             # sigmoid (EUP)

    mp = hh[0:3]      # mask   (channels already re-ordered to the input order)
    ap = hh[3:6]      # alpha
    wp = hh[6:9]      # watermark
    xr = x_ref[:, 2 * Wx + 2: 2 * Wx + 2 + Ao]                      # x at output px

    # watermark decomposition / recombination (exact divide for the eps denom)
    i_wm = jnp.clip((xr - ap * wp) / (1.0 - ap + 1e-6), 0.0, 1.0)
    g_out = mp * i_wm + (1.0 - mp) * xr                              # original order
    blend = xr * (1.0 - ap) + wp * ap
    # g_mask / blend are returned in the generator's (BGR-swapped) order ->
    # emit reversed channels directly (folds the post-kernel [:, ::-1]).
    gm_out = jnp.concatenate([mp[2:3], mp[1:2], mp[0:1]], axis=0)
    bl_out = jnp.concatenate([blend[2:3], blend[1:2], blend[0:1]], axis=0)

    # ---- compacting stores: drop the 4 pad columns of every image row ---------
    for io in range(th):
        src = slice(io * Wx, io * Wx + W)
        dst = slice(io * W, io * W + W)
        g_ref[:, dst] = g_out[:, src]
        gm_ref[:, dst] = gm_out[:, src]
        bl_ref[:, dst] = bl_out[:, src]


def init_params(key, in_ch=3, hidden=16):
    """Deterministic normal(0, 0.02) conv weights, zero biases (per weight_init)."""
    k1, k2, k3 = jax.random.split(key, 3)
    return {
        "w1": 0.02 * jax.random.normal(k1, (9 * in_ch, hidden), jnp.float32),
        "b1": jnp.zeros((hidden,), jnp.float32),
        "w2": 0.02 * jax.random.normal(k2, (9 * hidden, hidden), jnp.float32),
        "b2": jnp.zeros((hidden,), jnp.float32),
        # three 1x1 heads (mask, alpha, w), 3 channels each, packed
        "wh": 0.02 * jax.random.normal(k3, (hidden, 9), jnp.float32),
        "bh": jnp.zeros((9,), jnp.float32),
    }


def wdnet_forward(x_nchw, params):
    """Mirrors WDnet.forward: returns (G_, g_mask, x_s*(1-alpha) + w*alpha)."""
    N, C, H, W = x_nchw.shape
    assert C == 3, "WDnet channel swap requires 3 input channels"
    hidden = params["w1"].shape[1]

    th, nb = _pick_band(H, W, hidden)
    Wx = W + 4
    A = (th + 4) * Wx
    A_pad = _round_up(A + 2, 128)
    Ah = (th + 2) * Wx
    Ah_pad = _round_up(Ah + 2, 128)
    Ao = th * Wx
    Hp = nb * th

    x = x_nchw.astype(jnp.float32)

    # ---- overlapping row bands of x, channel-major flat pixel streams --------
    # 2-pixel spatial halo = receptive field of conv1 o conv2; both convs' zero
    # padding is represented by the spatial zero-pad of xp.
    xp = jnp.pad(x, ((0, 0), (0, 0), (2, 2 + Hp - H), (2, 2)))      # (N,3,Hp+4,Wx)
    bands = [xp[:, :, b * th: b * th + th + 4, :].reshape(N, 1, C, A)
             for b in range(nb)]
    x_bands = jnp.concatenate(bands, axis=1)                         # (N,nb,3,A)
    x_bands = jnp.pad(x_bands, ((0, 0), (0, 0), (0, 0), (0, A_pad - A)))

    # ---- h1 validity mask (conv2 zero-padding ring + out-of-image rows) ------
    jh = jnp.arange(Wx)
    col_ok = (jh >= 1) & (jh <= W)                                   # (Wx,)
    ih = jnp.arange(th + 2)
    row = jnp.arange(nb)[:, None] * th - 1 + ih[None, :]             # (nb, th+2)
    row_ok = (row >= 0) & (row < H)
    mask = (row_ok[:, :, None] & col_ok[None, None, :]).astype(jnp.float32)
    mask = mask.reshape(nb, 1, Ah)

    # ---- weights: channel-major per-tap matrices, BGR swaps folded at trace ---
    w1_cm = jnp.transpose(params["w1"].reshape(9, C, hidden)[:, ::-1, :], (0, 2, 1))
    w2_cm = jnp.transpose(params["w2"].reshape(9, hidden, hidden), (0, 2, 1))
    whp = jnp.transpose(
        params["wh"].reshape(hidden, 3, 3)[:, :, ::-1].reshape(hidden, 9))
    b1c = params["b1"].reshape(hidden, 1)
    b2c = params["b2"].reshape(hidden, 1)
    bhp = params["bh"].reshape(3, 3)[:, ::-1].reshape(9, 1)

    kernel = functools.partial(_wdnet_kernel, th=th, W=W, hidden=hidden)
    out_sds = jax.ShapeDtypeStruct((N, 3, Hp * W), jnp.float32)
    out_spec = pl.BlockSpec((None, 3, th * W), lambda b, n: (n, 0, b))

    n_steps = N * nb
    cost = pl.CostEstimate(
        flops=int(n_steps * (2 * 9 * 3 * hidden * Ah
                             + 2 * 9 * hidden * hidden * Ao
                             + 2 * 9 * hidden * Ao + 30 * Ao)),
        transcendentals=int(n_steps * 9 * Ao),
        bytes_accessed=int(4 * (x_bands.size + mask.size + 3 * N * 3 * Hp * W)),
    )

    G_f, gm_f, bl_f = pl.pallas_call(
        kernel,
        out_shape=(out_sds, out_sds, out_sds),
        grid_spec=pltpu.PrefetchScalarGridSpec(
            num_scalar_prefetch=0,
            grid=(nb, N),
            in_specs=[
                pl.BlockSpec((None, None, C, A_pad), lambda b, n: (n, b, 0, 0)),
                pl.BlockSpec((None, 1, Ah), lambda b, n: (b, 0, 0)),
                pl.BlockSpec((9, hidden, C), lambda b, n: (0, 0, 0)),
                pl.BlockSpec((hidden, 1), lambda b, n: (0, 0)),
                pl.BlockSpec((9, hidden, hidden), lambda b, n: (0, 0, 0)),
                pl.BlockSpec((hidden, 1), lambda b, n: (0, 0)),
                pl.BlockSpec((9, hidden), lambda b, n: (0, 0)),
                pl.BlockSpec((9, 1), lambda b, n: (0, 0)),
            ],
            out_specs=[out_spec, out_spec, out_spec],
            scratch_shapes=[pltpu.VMEM((hidden, Ah_pad), jnp.float32)],
        ),
        compiler_params=pltpu.CompilerParams(
            dimension_semantics=("parallel", "parallel"),
            vmem_limit_bytes=32 * 1024 * 1024,
        ),
        cost_estimate=cost,
    )(x_bands, mask, w1_cm, b1c, w2_cm, b2c, whp, bhp)

    def finish(a):
        return a.reshape(N, 3, Hp, W)[:, :, :H, :]

    return finish(G_f), finish(gm_f), finish(bl_f)


# ------------------------------------------------------------------------------
if __name__ == "__main__":
    key = jax.random.PRNGKey(0)
    kx, kp = jax.random.split(key)

    # NCHW input (PyTorch convention): batch=2, channels=3 (required by the
    # [2, 1, 0] channel swap), spatial 16x16.
    x = jax.random.uniform(kx, (2, 3, 16, 16), dtype=jnp.float32)
    params = init_params(kp, in_ch=3, hidden=16)

    fwd = jax.jit(wdnet_forward)
    G_, g_mask, blend = fwd(x, params)
    jax.block_until_ready((G_, g_mask, blend))

    assert G_.shape == (2, 3, 16, 16)
    assert g_mask.shape == (2, 3, 16, 16)
    assert blend.shape == (2, 3, 16, 16)
    assert bool(jnp.all(jnp.isfinite(G_)))
    assert bool(jnp.all(jnp.isfinite(g_mask)))
    assert bool(jnp.all(jnp.isfinite(blend)))
    print("KERNEL_OK")
</pallas_src>

<mosaic_0001>
module attributes {stable_mosaic.version = 11 : i64} {
  func.func @_wdnet_kernel(%arg0: i32, %arg1: i32, %arg2: memref<1x1x3x512xf32, #tpu.memory_space<vmem>>, %arg3: memref<1x1x360xf32, #tpu.memory_space<vmem>>, %arg4: memref<9x16x3xf32, #tpu.memory_space<vmem>>, %arg5: memref<16x1xf32, #tpu.memory_space<vmem>>, %arg6: memref<9x16x16xf32, #tpu.memory_space<vmem>>, %arg7: memref<16x1xf32, #tpu.memory_space<vmem>>, %arg8: memref<9x16xf32, #tpu.memory_space<vmem>>, %arg9: memref<9x1xf32, #tpu.memory_space<vmem>>, %arg10: memref<1x3x256xf32, #tpu.memory_space<vmem>>, %arg11: memref<1x3x256xf32, #tpu.memory_space<vmem>>, %arg12: memref<1x3x256xf32, #tpu.memory_space<vmem>>, %arg13: memref<16x384xf32, #tpu.memory_space<vmem>>) attributes {dimension_semantics = [#tpu.dimension_semantics<parallel>, #tpu.dimension_semantics<parallel>], iteration_bounds = array<i64: 1, 2>, scalar_prefetch = 0 : i64, scratch_operands = 1 : i64, tpu.core_type = #tpu.core_type<tc>, window_params = [{transform_indices = @transform_0, window_bounds = array<i64: 1, 1, 3, 512>}, {transform_indices = @transform_1, window_bounds = array<i64: 1, 1, 360>}, {pipeline_mode = #tpu.pipeline_mode<synchronous>, transform_indices = @transform_2, window_bounds = array<i64: 9, 16, 3>}, {pipeline_mode = #tpu.pipeline_mode<synchronous>, transform_indices = @transform_3, window_bounds = array<i64: 16, 1>}, {pipeline_mode = #tpu.pipeline_mode<synchronous>, transform_indices = @transform_4, window_bounds = array<i64: 9, 16, 16>}, {pipeline_mode = #tpu.pipeline_mode<synchronous>, transform_indices = @transform_5, window_bounds = array<i64: 16, 1>}, {pipeline_mode = #tpu.pipeline_mode<synchronous>, transform_indices = @transform_6, window_bounds = array<i64: 9, 16>}, {pipeline_mode = #tpu.pipeline_mode<synchronous>, transform_indices = @transform_7, window_bounds = array<i64: 9, 1>}, {transform_indices = @transform_8, window_bounds = array<i64: 1, 3, 256>}, {transform_indices = @transform_9, window_bounds = array<i64: 1, 3, 256>}, {transform_indices = @transform_10, window_bounds = array<i64: 1, 3, 256>}]} {
    %c0 = arith.constant 0 : index
    %c0_0 = arith.constant 0 : index
    %c0_1 = arith.constant 0 : index
    %0 = vector.load %arg4[%c0, %c0_0, %c0_1] : memref<9x16x3xf32, #tpu.memory_space<vmem>>, vector<1x16x3xf32>
    %1 = vector.shape_cast %0 : vector<1x16x3xf32> to vector<16x3xf32>
    %c0_2 = arith.constant 0 : index
    %c0_3 = arith.constant 0 : index
    %c0_4 = arith.constant 0 : index
    %c0_5 = arith.constant 0 : index
    %2 = vector.load %arg2[%c0_2, %c0_3, %c0_4, %c0_5] : memref<1x1x3x512xf32, #tpu.memory_space<vmem>>, vector<1x1x3x360xf32>
    %3 = vector.shape_cast %2 : vector<1x1x3x360xf32> to vector<3x360xf32>
    %cst = arith.constant dense<0.000000e+00> : vector<16x360xf32>
    %4 = tpu.matmul %1, %3, %cst {dimension_numbers = #tpu.dot_dimension_numbers<[1], [0], [0], [1], [0, 0, 1, 1], [], []>} : vector<16x3xf32>, vector<3x360xf32>, vector<16x360xf32> -> vector<16x360xf32>
    %c1 = arith.constant 1 : index
    %c0_6 = arith.constant 0 : index
    %c0_7 = arith.constant 0 : index
    %5 = vector.load %arg4[%c1, %c0_6, %c0_7] : memref<9x16x3xf32, #tpu.memory_space<vmem>>, vector<1x16x3xf32>
    %6 = vector.shape_cast %5 : vector<1x16x3xf32> to vector<16x3xf32>
    %c0_8 = arith.constant 0 : index
    %c0_9 = arith.constant 0 : index
    %c0_10 = arith.constant 0 : index
    %c1_11 = arith.constant 1 : index
    %7 = vector.load %arg2[%c0_8, %c0_9, %c0_10, %c1_11] : memref<1x1x3x512xf32, #tpu.memory_space<vmem>>, vector<1x1x3x360xf32>
    %8 = vector.shape_cast %7 : vector<1x1x3x360xf32> to vector<3x360xf32>
    %cst_12 = arith.constant dense<0.000000e+00> : vector<16x360xf32>
    %9 = tpu.matmul %6, %8, %cst_12 {dimension_numbers = #tpu.dot_dimension_numbers<[1], [0], [0], [1], [0, 0, 1, 1], [], []>} : vector<16x3xf32>, vector<3x360xf32>, vector<16x360xf32> -> vector<16x360xf32>
    %10 = arith.addf %4, %9 : vector<16x360xf32>
    %c2 = arith.constant 2 : index
    %c0_13 = arith.constant 0 : index
    %c0_14 = arith.constant 0 : index
    %11 = vector.load %arg4[%c2, %c0_13, %c0_14] : memref<9x16x3xf32, #tpu.memory_space<vmem>>, vector<1x16x3xf32>
    %12 = vector.shape_cast %11 : vector<1x16x3xf32> to vector<16x3xf32>
    %c0_15 = arith.constant 0 : index
    %c0_16 = arith.constant 0 : index
    %c0_17 = arith.constant 0 : index
    %c2_18 = arith.constant 2 : index
    %13 = vector.load %arg2[%c0_15, %c0_16, %c0_17, %c2_18] : memref<1x1x3x512xf32, #tpu.memory_space<vmem>>, vector<1x1x3x360xf32>
    %14 = vector.shape_cast %13 : vector<1x1x3x360xf32> to vector<3x360xf32>
    %cst_19 = arith.constant dense<0.000000e+00> : vector<16x360xf32>
    %15 = tpu.matmul %12, %14, %cst_19 {dimension_numbers = #tpu.dot_dimension_numbers<[1], [0], [0], [1], [0, 0, 1, 1], [], []>} : vector<16x3xf32>, vector<3x360xf32>, vector<16x360xf32> -> vector<16x360xf32>
    %16 = arith.addf %10, %15 : vector<16x360xf32>
    %c3 = arith.constant 3 : index
    %c0_20 = arith.constant 0 : index
    %c0_21 = arith.constant 0 : index
    %17 = vector.load %arg4[%c3, %c0_20, %c0_21] : memref<9x16x3xf32, #tpu.memory_space<vmem>>, vector<1x16x3xf32>
    %18 = vector.shape_cast %17 : vector<1x16x3xf32> to vector<16x3xf32>
    %c0_22 = arith.constant 0 : index
    %c0_23 = arith.constant 0 : index
    %c0_24 = arith.constant 0 : index
    %c20 = arith.constant 20 : index
    %19 = vector.load %arg2[%c0_22, %c0_23, %c0_24, %c20] : memref<1x1x3x512xf32, #tpu.memory_space<vmem>>, vector<1x1x3x360xf32>
    %20 = vector.shape_cast %19 : vector<1x1x3x360xf32> to vector<3x360xf32>
    %cst_25 = arith.constant dense<0.000000e+00> : vector<16x360xf32>
    %21 = tpu.matmul %18, %20, %cst_25 {dimension_numbers = #tpu.dot_dimension_numbers<[1], [0], [0], [1], [0, 0, 1, 1], [], []>} : vector<16x3xf32>, vector<3x360xf32>, vector<16x360xf32> -> vector<16x360xf32>
    %22 = arith.addf %16, %21 : vector<16x360xf32>
    %c4 = arith.constant 4 : index
    %c0_26 = arith.constant 0 : index
    %c0_27 = arith.constant 0 : index
    %23 = vector.load %arg4[%c4, %c0_26, %c0_27] : memref<9x16x3xf32, #tpu.memory_space<vmem>>, vector<1x16x3xf32>
    %24 = vector.shape_cast %23 : vector<1x16x3xf32> to vector<16x3xf32>
    %c0_28 = arith.constant 0 : index
    %c0_29 = arith.constant 0 : index
    %c0_30 = arith.constant 0 : index
    %c21 = arith.constant 21 : index
    %25 = vector.load %arg2[%c0_28, %c0_29, %c0_30, %c21] : memref<1x1x3x512xf32, #tpu.memory_space<vmem>>, vector<1x1x3x360xf32>
    %26 = vector.shape_cast %25 : vector<1x1x3x360xf32> to vector<3x360xf32>
    %cst_31 = arith.constant dense<0.000000e+00> : vector<16x360xf32>
    %27 = tpu.matmul %24, %26, %cst_31 {dimension_numbers = #tpu.dot_dimension_numbers<[1], [0], [0], [1], [0, 0, 1, 1], [], []>} : vector<16x3xf32>, vector<3x360xf32>, vector<16x360xf32> -> vector<16x360xf32>
    %28 = arith.addf %22, %27 : vector<16x360xf32>
    %c5 = arith.constant 5 : index
    %c0_32 = arith.constant 0 : index
    %c0_33 = arith.constant 0 : index
    %29 = vector.load %arg4[%c5, %c0_32, %c0_33] : memref<9x16x3xf32, #tpu.memory_space<vmem>>, vector<1x16x3xf32>
    %30 = vector.shape_cast %29 : vector<1x16x3xf32> to vector<16x3xf32>
    %c0_34 = arith.constant 0 : index
    %c0_35 = arith.constant 0 : index
    %c0_36 = arith.constant 0 : index
    %c22 = arith.constant 22 : index
    %31 = vector.load %arg2[%c0_34, %c0_35, %c0_36, %c22] : memref<1x1x3x512xf32, #tpu.memory_space<vmem>>, vector<1x1x3x360xf32>
    %32 = vector.shape_cast %31 : vector<1x1x3x360xf32> to vector<3x360xf32>
    %cst_37 = arith.constant dense<0.000000e+00> : vector<16x360xf32>
    %33 = tpu.matmul %30, %32, %cst_37 {dimension_numbers = #tpu.dot_dimension_numbers<[1], [0], [0], [1], [0, 0, 1, 1], [], []>} : vector<16x3xf32>, vector<3x360xf32>, vector<16x360xf32> -> vector<16x360xf32>
    %34 = arith.addf %28, %33 : vector<16x360xf32>
    %c6 = arith.constant 6 : index
    %c0_38 = arith.constant 0 : index
    %c0_39 = arith.constant 0 : index
    %35 = vector.load %arg4[%c6, %c0_38, %c0_39] : memref<9x16x3xf32, #tpu.memory_space<vmem>>, vector<1x16x3xf32>
    %36 = vector.shape_cast %35 : vector<1x16x3xf32> to vector<16x3xf32>
    %c0_40 = arith.constant 0 : index
    %c0_41 = arith.constant 0 : index
    %c0_42 = arith.constant 0 : index
    %c40 = arith.constant 40 : index
    %37 = vector.load %arg2[%c0_40, %c0_41, %c0_42, %c40] : memref<1x1x3x512xf32, #tpu.memory_space<vmem>>, vector<1x1x3x360xf32>
    %38 = vector.shape_cast %37 : vector<1x1x3x360xf32> to vector<3x360xf32>
    %cst_43 = arith.constant dense<0.000000e+00> : vector<16x360xf32>
    %39 = tpu.matmul %36, %38, %cst_43 {dimension_numbers = #tpu.dot_dimension_numbers<[1], [0], [0], [1], [0, 0, 1, 1], [], []>} : vector<16x3xf32>, vector<3x360xf32>, vector<16x360xf32> -> vector<16x360xf32>
    %40 = arith.addf %34, %39 : vector<16x360xf32>
    %c7 = arith.constant 7 : index
    %c0_44 = arith.constant 0 : index
    %c0_45 = arith.constant 0 : index
    %41 = vector.load %arg4[%c7, %c0_44, %c0_45] : memref<9x16x3xf32, #tpu.memory_space<vmem>>, vector<1x16x3xf32>
    %42 = vector.shape_cast %41 : vector<1x16x3xf32> to vector<16x3xf32>
    %c0_46 = arith.constant 0 : index
    %c0_47 = arith.constant 0 : index
    %c0_48 = arith.constant 0 : index
    %c41 = arith.constant 41 : index
    %43 = vector.load %arg2[%c0_46, %c0_47, %c0_48, %c41] : memref<1x1x3x512xf32, #tpu.memory_space<vmem>>, vector<1x1x3x360xf32>
    %44 = vector.shape_cast %43 : vector<1x1x3x360xf32> to vector<3x360xf32>
    %cst_49 = arith.constant dense<0.000000e+00> : vector<16x360xf32>
    %45 = tpu.matmul %42, %44, %cst_49 {dimension_numbers = #tpu.dot_dimension_numbers<[1], [0], [0], [1], [0, 0, 1, 1], [], []>} : vector<16x3xf32>, vector<3x360xf32>, vector<16x360xf32> -> vector<16x360xf32>
    %46 = arith.addf %40, %45 : vector<16x360xf32>
    %c8 = arith.constant 8 : index
    %c0_50 = arith.constant 0 : index
    %c0_51 = arith.constant 0 : index
    %47 = vector.load %arg4[%c8, %c0_50, %c0_51] : memref<9x16x3xf32, #tpu.memory_space<vmem>>, vector<1x16x3xf32>
    %48 = vector.shape_cast %47 : vector<1x16x3xf32> to vector<16x3xf32>
    %c0_52 = arith.constant 0 : index
    %c0_53 = arith.constant 0 : index
    %c0_54 = arith.constant 0 : index
    %c42 = arith.constant 42 : index
    %49 = vector.load %arg2[%c0_52, %c0_53, %c0_54, %c42] : memref<1x1x3x512xf32, #tpu.memory_space<vmem>>, vector<1x1x3x360xf32>
    %50 = vector.shape_cast %49 : vector<1x1x3x360xf32> to vector<3x360xf32>
    %cst_55 = arith.constant dense<0.000000e+00> : vector<16x360xf32>
    %51 = tpu.matmul %48, %50, %cst_55 {dimension_numbers = #tpu.dot_dimension_numbers<[1], [0], [0], [1], [0, 0, 1, 1], [], []>} : vector<16x3xf32>, vector<3x360xf32>, vector<16x360xf32> -> vector<16x360xf32>
    %52 = arith.addf %46, %51 : vector<16x360xf32>
    %c0_56 = arith.constant 0 : index
    %c0_57 = arith.constant 0 : index
    %53 = vector.load %arg5[%c0_56, %c0_57] : memref<16x1xf32, #tpu.memory_space<vmem>>, vector<16x1xf32>
    %54 = vector.broadcast %53 : vector<16x1xf32> to vector<16x360xf32>
    %55 = arith.addf %52, %54 : vector<16x360xf32>
    %cst_58 = arith.constant 0.000000e+00 : f32
    %56 = vector.broadcast %cst_58 : f32 to vector<16x360xf32>
    %57 = arith.maximumf %55, %56 : vector<16x360xf32>
    %c0_59 = arith.constant 0 : index
    %c0_60 = arith.constant 0 : index
    %c0_61 = arith.constant 0 : index
    %58 = vector.load %arg3[%c0_59, %c0_60, %c0_61] : memref<1x1x360xf32, #tpu.memory_space<vmem>>, vector<1x1x360xf32>
    %59 = vector.shape_cast %58 : vector<1x1x360xf32> to vector<1x360xf32>
    %60 = vector.broadcast %59 : vector<1x360xf32> to vector<16x360xf32>
    %61 = arith.mulf %57, %60 : vector<16x360xf32>
    %c0_62 = arith.constant 0 : index
    %c0_63 = arith.constant 0 : index
    %62 = vector.load %arg13[%c0_62, %c0_63] : memref<16x384xf32, #tpu.memory_space<vmem>>, vector<16x360xf32>
    tpu.vector_store %arg13[%c0_62, %c0_63], %61 {strides = array<i32>} : memref<16x384xf32, #tpu.memory_space<vmem>>, vector<16x360xf32>,
    %cst_64 = arith.constant 0.000000e+00 : f32
    %63 = vector.broadcast %cst_64 : f32 to vector<16x24xf32>
    %c0_65 = arith.constant 0 : index
    %c360 = arith.constant 360 : index
    %64 = vector.load %arg13[%c0_65, %c360] : memref<16x384xf32, #tpu.memory_space<vmem>>, vector<16x24xf32>
    tpu.vector_store %arg13[%c0_65, %c360], %63 {strides = array<i32>} : memref<16x384xf32, #tpu.memory_space<vmem>>, vector<16x24xf32>,
    %c0_66 = arith.constant 0 : index
    %c0_67 = arith.constant 0 : index
    %c0_68 = arith.constant 0 : index
    %65 = vector.load %arg6[%c0_66, %c0_67, %c0_68] : memref<9x16x16xf32, #tpu.memory_space<vmem>>, vector<1x16x16xf32>
    %66 = vector.shape_cast %65 : vector<1x16x16xf32> to vector<16x16xf32>
    %c0_69 = arith.constant 0 : index
    %c0_70 = arith.constant 0 : index
    %67 = vector.load %arg13[%c0_69, %c0_70] : memref<16x384xf32, #tpu.memory_space<vmem>>, vector<16x320xf32>
    %cst_71 = arith.constant dense<0.000000e+00> : vector<16x320xf32>
    %68 = tpu.matmul %66, %67, %cst_71 {dimension_numbers = #tpu.dot_dimension_numbers<[1], [0], [0], [1], [0, 0, 1, 1], [], []>} : vector<16x16xf32>, vector<16x320xf32>, vector<16x320xf32> -> vector<16x320xf32>
    %c1_72 = arith.constant 1 : index
    %c0_73 = arith.constant 0 : index
    %c0_74 = arith.constant 0 : index
    %69 = vector.load %arg6[%c1_72, %c0_73, %c0_74] : memref<9x16x16xf32, #tpu.memory_space<vmem>>, vector<1x16x16xf32>
    %70 = vector.shape_cast %69 : vector<1x16x16xf32> to vector<16x16xf32>
    %c0_75 = arith.constant 0 : index
    %c1_76 = arith.constant 1 : index
    %71 = vector.load %arg13[%c0_75, %c1_76] : memref<16x384xf32, #tpu.memory_space<vmem>>, vector<16x320xf32>
    %cst_77 = arith.constant dense<0.000000e+00> : vector<16x320xf32>
    %72 = tpu.matmul %70, %71, %cst_77 {dimension_numbers = #tpu.dot_dimension_numbers<[1], [0], [0], [1], [0, 0, 1, 1], [], []>} : vector<16x16xf32>, vector<16x320xf32>, vector<16x320xf32> -> vector<16x320xf32>
    %73 = arith.addf %68, %72 : vector<16x320xf32>
    %c2_78 = arith.constant 2 : index
    %c0_79 = arith.constant 0 : index
    %c0_80 = arith.constant 0 : index
    %74 = vector.load %arg6[%c2_78, %c0_79, %c0_80] : memref<9x16x16xf32, #tpu.memory_space<vmem>>, vector<1x16x16xf32>
    %75 = vector.shape_cast %74 : vector<1x16x16xf32> to vector<16x16xf32>
    %c0_81 = arith.constant 0 : index
    %c2_82 = arith.constant 2 : index
    %76 = vector.load %arg13[%c0_81, %c2_82] : memref<16x384xf32, #tpu.memory_space<vmem>>, vector<16x320xf32>
    %cst_83 = arith.constant dense<0.000000e+00> : vector<16x320xf32>
    %77 = tpu.matmul %75, %76, %cst_83 {dimension_numbers = #tpu.dot_dimension_numbers<[1], [0], [0], [1], [0, 0, 1, 1], [], []>} : vector<16x16xf32>, vector<16x320xf32>, vector<16x320xf32> -> vector<16x320xf32>
    %78 = arith.addf %73, %77 : vector<16x320xf32>
    %c3_84 = arith.constant 3 : index
    %c0_85 = arith.constant 0 : index
    %c0_86 = arith.constant 0 : index
    %79 = vector.load %arg6[%c3_84, %c0_85, %c0_86] : memref<9x16x16xf32, #tpu.memory_space<vmem>>, vector<1x16x16xf32>
    %80 = vector.shape_cast %79 : vector<1x16x16xf32> to vector<16x16xf32>
    %c0_87 = arith.constant 0 : index
    %c20_88 = arith.constant 20 : index
    %81 = vector.load %arg13[%c0_87, %c20_88] : memref<16x384xf32, #tpu.memory_space<vmem>>, vector<16x320xf32>
    %cst_89 = arith.constant dense<0.000000e+00> : vector<16x320xf32>
    %82 = tpu.matmul %80, %81, %cst_89 {dimension_numbers = #tpu.dot_dimension_numbers<[1], [0], [0], [1], [0, 0, 1, 1], [], []>} : vector<16x16xf32>, vector<16x320xf32>, vector<16x320xf32> -> vector<16x320xf32>
    %83 = arith.addf %78, %82 : vector<16x320xf32>
    %c4_90 = arith.constant 4 : index
    %c0_91 = arith.constant 0 : index
    %c0_92 = arith.constant 0 : index
    %84 = vector.load %arg6[%c4_90, %c0_91, %c0_92] : memref<9x16x16xf32, #tpu.memory_space<vmem>>, vector<1x16x16xf32>
    %85 = vector.shape_cast %84 : vector<1x16x16xf32> to vector<16x16xf32>
    %c0_93 = arith.constant 0 : index
    %c21_94 = arith.constant 21 : index
    %86 = vector.load %arg13[%c0_93, %c21_94] : memref<16x384xf32, #tpu.memory_space<vmem>>, vector<16x320xf32>
    %cst_95 = arith.constant dense<0.000000e+00> : vector<16x320xf32>
    %87 = tpu.matmul %85, %86, %cst_95 {dimension_numbers = #tpu.dot_dimension_numbers<[1], [0], [0], [1], [0, 0, 1, 1], [], []>} : vector<16x16xf32>, vector<16x320xf32>, vector<16x320xf32> -> vector<16x320xf32>
    %88 = arith.addf %83, %87 : vector<16x320xf32>
    %c5_96 = arith.constant 5 : index
    %c0_97 = arith.constant 0 : index
    %c0_98 = arith.constant 0 : index
    %89 = vector.load %arg6[%c5_96, %c0_97, %c0_98] : memref<9x16x16xf32, #tpu.memory_space<vmem>>, vector<1x16x16xf32>
    %90 = vector.shape_cast %89 : vector<1x16x16xf32> to vector<16x16xf32>
    %c0_99 = arith.constant 0 : index
    %c22_100 = arith.constant 22 : index
    %91 = vector.load %arg13[%c0_99, %c22_100] : memref<16x384xf32, #tpu.memory_space<vmem>>, vector<16x320xf32>
    %cst_101 = arith.constant dense<0.000000e+00> : vector<16x320xf32>
    %92 = tpu.matmul %90, %91, %cst_101 {dimension_numbers = #tpu.dot_dimension_numbers<[1], [0], [0], [1], [0, 0, 1, 1], [], []>} : vector<16x16xf32>, vector<16x320xf32>, vector<16x320xf32> -> vector<16x320xf32>
    %93 = arith.addf %88, %92 : vector<16x320xf32>
    %c6_102 = arith.constant 6 : index
    %c0_103 = arith.constant 0 : index
    %c0_104 = arith.constant 0 : index
    %94 = vector.load %arg6[%c6_102, %c0_103, %c0_104] : memref<9x16x16xf32, #tpu.memory_space<vmem>>, vector<1x16x16xf32>
    %95 = vector.shape_cast %94 : vector<1x16x16xf32> to vector<16x16xf32>
    %c0_105 = arith.constant 0 : index
    %c40_106 = arith.constant 40 : index
    %96 = vector.load %arg13[%c0_105, %c40_106] : memref<16x384xf32, #tpu.memory_space<vmem>>, vector<16x320xf32>
    %cst_107 = arith.constant dense<0.000000e+00> : vector<16x320xf32>
    %97 = tpu.matmul %95, %96, %cst_107 {dimension_numbers = #tpu.dot_dimension_numbers<[1], [0], [0], [1], [0, 0, 1, 1], [], []>} : vector<16x16xf32>, vector<16x320xf32>, vector<16x320xf32> -> vector<16x320xf32>
    %98 = arith.addf %93, %97 : vector<16x320xf32>
    %c7_108 = arith.constant 7 : index
    %c0_109 = arith.constant 0 : index
    %c0_110 = arith.constant 0 : index
    %99 = vector.load %arg6[%c7_108, %c0_109, %c0_110] : memref<9x16x16xf32, #tpu.memory_space<vmem>>, vector<1x16x16xf32>
    %100 = vector.shape_cast %99 : vector<1x16x16xf32> to vector<16x16xf32>
    %c0_111 = arith.constant 0 : index
    %c41_112 = arith.constant 41 : index
    %101 = vector.load %arg13[%c0_111, %c41_112] : memref<16x384xf32, #tpu.memory_space<vmem>>, vector<16x320xf32>
    %cst_113 = arith.constant dense<0.000000e+00> : vector<16x320xf32>
    %102 = tpu.matmul %100, %101, %cst_113 {dimension_numbers = #tpu.dot_dimension_numbers<[1], [0], [0], [1], [0, 0, 1, 1], [], []>} : vector<16x16xf32>, vector<16x320xf32>, vector<16x320xf32> -> vector<16x320xf32>
    %103 = arith.addf %98, %102 : vector<16x320xf32>
    %c8_114 = arith.constant 8 : index
    %c0_115 = arith.constant 0 : index
    %c0_116 = arith.constant 0 : index
    %104 = vector.load %arg6[%c8_114, %c0_115, %c0_116] : memref<9x16x16xf32, #tpu.memory_space<vmem>>, vector<1x16x16xf32>
    %105 = vector.shape_cast %104 : vector<1x16x16xf32> to vector<16x16xf32>
    %c0_117 = arith.constant 0 : index
    %c42_118 = arith.constant 42 : index
    %106 = vector.load %arg13[%c0_117, %c42_118] : memref<16x384xf32, #tpu.memory_space<vmem>>, vector<16x320xf32>
    %cst_119 = arith.constant dense<0.000000e+00> : vector<16x320xf32>
    %107 = tpu.matmul %105, %106, %cst_119 {dimension_numbers = #tpu.dot_dimension_numbers<[1], [0], [0], [1], [0, 0, 1, 1], [], []>} : vector<16x16xf32>, vector<16x320xf32>, vector<16x320xf32> -> vector<16x320xf32>
    %108 = arith.addf %103, %107 : vector<16x320xf32>
    %c0_120 = arith.constant 0 : index
    %c0_121 = arith.constant 0 : index
    %109 = vector.load %arg7[%c0_120, %c0_121] : memref<16x1xf32, #tpu.memory_space<vmem>>, vector<16x1xf32>
    %110 = vector.broadcast %109 : vector<16x1xf32> to vector<16x320xf32>
    %111 = arith.addf %108, %110 : vector<16x320xf32>
    %cst_122 = arith.constant 0.000000e+00 : f32
    %112 = vector.broadcast %cst_122 : f32 to vector<16x320xf32>
    %113 = arith.maximumf %111, %112 : vector<16x320xf32>
    %c0_123 = arith.constant 0 : index
    %c0_124 = arith.constant 0 : index
    %114 = vector.load %arg8[%c0_123, %c0_124] : memref<9x16xf32, #tpu.memory_space<vmem>>, vector<9x16xf32>
    %cst_125 = arith.constant dense<0.000000e+00> : vector<9x320xf32>
    %115 = tpu.matmul %114, %113, %cst_125 {dimension_numbers = #tpu.dot_dimension_numbers<[1], [0], [0], [1], [0, 0, 1, 1], [], []>} : vector<9x16xf32>, vector<16x320xf32>, vector<9x320xf32> -> vector<9x320xf32>
    %c0_126 = arith.constant 0 : index
    %c0_127 = arith.constant 0 : index
    %116 = vector.load %arg9[%c0_126, %c0_127] : memref<9x1xf32, #tpu.memory_space<vmem>>, vector<9x1xf32>
    %117 = vector.broadcast %116 : vector<9x1xf32> to vector<9x320xf32>
    %118 = arith.addf %115, %117 : vector<9x320xf32>
    %cst_128 = arith.constant 0.000000e+00 : f32
    %119 = vector.broadcast %cst_128 : f32 to vector<9x320xf32>
    %120 = arith.subf %119, %118 : vector<9x320xf32>
    %121 = math.exp %120 : vector<9x320xf32>
    %cst_129 = arith.constant 1.000000e+00 : f32
    %122 = vector.broadcast %cst_129 : f32 to vector<9x320xf32>
    %123 = arith.addf %122, %121 : vector<9x320xf32>
    %124 = tpu.reciprocal %123 {approx = true} : vector<9x320xf32> -> vector<9x320xf32>
    %125 = vector.extract_strided_slice %124 {offsets = [0, 0], sizes = [3, 320], strides = [1, 1]} : vector<9x320xf32> to vector<3x320xf32>
    %126 = vector.extract_strided_slice %124 {offsets = [3, 0], sizes = [3, 320], strides = [1, 1]} : vector<9x320xf32> to vector<3x320xf32>
    %127 = vector.extract_strided_slice %124 {offsets = [6, 0], sizes = [3, 320], strides = [1, 1]} : vector<9x320xf32> to vector<3x320xf32>
    %c0_130 = arith.constant 0 : index
    %c0_131 = arith.constant 0 : index
    %c0_132 = arith.constant 0 : index
    %c42_133 = arith.constant 42 : index
    %128 = vector.load %arg2[%c0_130, %c0_131, %c0_132, %c42_133] : memref<1x1x3x512xf32, #tpu.memory_space<vmem>>, vector<1x1x3x320xf32>
    %129 = vector.shape_cast %128 : vector<1x1x3x320xf32> to vector<3x320xf32>
    %130 = arith.mulf %126, %127 : vector<3x320xf32>
    %131 = arith.subf %129, %130 : vector<3x320xf32>
    %cst_134 = arith.constant 1.000000e+00 : f32
    %132 = vector.broadcast %cst_134 : f32 to vector<3x320xf32>
    %133 = arith.subf %132, %126 : vector<3x320xf32>
    %cst_135 = arith.constant 9.99999997E-7 : f32
    %134 = vector.broadcast %cst_135 : f32 to vector<3x320xf32>
    %135 = arith.addf %133, %134 : vector<3x320xf32>
    %136 = arith.divf %131, %135 : vector<3x320xf32>
    %cst_136 = arith.constant 0.000000e+00 : f32
    %cst_137 = arith.constant 1.000000e+00 : f32
    %137 = vector.broadcast %cst_136 : f32 to vector<3x320xf32>
    %138 = arith.maximumf %137, %136 : vector<3x320xf32>
    %139 = vector.broadcast %cst_137 : f32 to vector<3x320xf32>
    %140 = arith.minimumf %139, %138 : vector<3x320xf32>
    %141 = arith.mulf %125, %140 : vector<3x320xf32>
    %cst_138 = arith.constant 1.000000e+00 : f32
    %142 = vector.broadcast %cst_138 : f32 to vector<3x320xf32>
    %143 = arith.subf %142, %125 : vector<3x320xf32>
    %144 = arith.mulf %143, %129 : vector<3x320xf32>
    %145 = arith.addf %141, %144 : vector<3x320xf32>
    %cst_139 = arith.constant 1.000000e+00 : f32
    %146 = vector.broadcast %cst_139 : f32 to vector<3x320xf32>
    %147 = arith.subf %146, %126 : vector<3x320xf32>
    %148 = arith.mulf %129, %147 : vector<3x320xf32>
    %149 = arith.mulf %127, %126 : vector<3x320xf32>
    %150 = arith.addf %148, %149 : vector<3x320xf32>
    %151 = vector.extract_strided_slice %125 {offsets = [2, 0], sizes = [1, 320], strides = [1, 1]} : vector<3x320xf32> to vector<1x320xf32>
    %152 = vector.extract_strided_slice %125 {offsets = [1, 0], sizes = [1, 320], strides = [1, 1]} : vector<3x320xf32> to vector<1x320xf32>
    %153 = vector.extract_strided_slice %125 {offsets = [0, 0], sizes = [1, 320], strides = [1, 1]} : vector<3x320xf32> to vector<1x320xf32>
    %154 = tpu.concatenate %151, %152, %153 in 0 : vector<1x320xf32>, vector<1x320xf32>, vector<1x320xf32> -> vector<3x320xf32>
    %155 = vector.extract_strided_slice %150 {offsets = [2, 0], sizes = [1, 320], strides = [1, 1]} : vector<3x320xf32> to vector<1x320xf32>
    %156 = vector.extract_strided_slice %150 {offsets = [1, 0], sizes = [1, 320], strides = [1, 1]} : vector<3x320xf32> to vector<1x320xf32>
    %157 = vector.extract_strided_slice %150 {offsets = [0, 0], sizes = [1, 320], strides = [1, 1]} : vector<3x320xf32> to vector<1x320xf32>
    %158 = tpu.concatenate %155, %156, %157 in 0 : vector<1x320xf32>, vector<1x320xf32>, vector<1x320xf32> -> vector<3x320xf32>
    %159 = vector.extract_strided_slice %145 {offsets = [0, 0], sizes = [3, 16], strides = [1, 1]} : vector<3x320xf32> to vector<3x16xf32>
    %c0_140 = arith.constant 0 : index
    %c0_141 = arith.constant 0 : index
    %c0_142 = arith.constant 0 : index
    %160 = vector.load %arg10[%c0_140, %c0_141, %c0_142] : memref<1x3x256xf32, #tpu.memory_space<vmem>>, vector<1x3x16xf32>
    %161 = vector.shape_cast %160 : vector<1x3x16xf32> to vector<3x16xf32>
    %162 = vector.shape_cast %159 : vector<3x16xf32> to vector<1x3x16xf32>
    tpu.vector_store %arg10[%c0_140, %c0_141, %c0_142], %162 {strides = array<i32>} : memref<1x3x256xf32, #tpu.memory_space<vmem>>, vector<1x3x16xf32>,
    %163 = vector.extract_strided_slice %154 {offsets = [0, 0], sizes = [3, 16], strides = [1, 1]} : vector<3x320xf32> to vector<3x16xf32>
    %c0_143 = arith.constant 0 : index
    %c0_144 = arith.constant 0 : index
    %c0_145 = arith.constant 0 : index
    %164 = vector.load %arg11[%c0_143, %c0_144, %c0_145] : memref<1x3x256xf32, #tpu.memory_space<vmem>>, vector<1x3x16xf32>
    %165 = vector.shape_cast %164 : vector<1x3x16xf32> to vector<3x16xf32>
    %166 = vector.shape_cast %163 : vector<3x16xf32> to vector<1x3x16xf32>
    tpu.vector_store %arg11[%c0_143, %c0_144, %c0_145], %166 {strides = array<i32>} : memref<1x3x256xf32, #tpu.memory_space<vmem>>, vector<1x3x16xf32>,
    %167 = vector.extract_strided_slice %158 {offsets = [0, 0], sizes = [3, 16], strides = [1, 1]} : vector<3x320xf32> to vector<3x16xf32>
    %c0_146 = arith.constant 0 : index
    %c0_147 = arith.constant 0 : index
    %c0_148 = arith.constant 0 : index
    %168 = vector.load %arg12[%c0_146, %c0_147, %c0_148] : memref<1x3x256xf32, #tpu.memory_space<vmem>>, vector<1x3x16xf32>
    %169 = vector.shape_cast %168 : vector<1x3x16xf32> to vector<3x16xf32>
    %170 = vector.shape_cast %167 : vector<3x16xf32> to vector<1x3x16xf32>
    tpu.vector_store %arg12[%c0_146, %c0_147, %c0_148], %170 {strides = array<i32>} : memref<1x3x256xf32, #tpu.memory_space<vmem>>, vector<1x3x16xf32>,
    %171 = vector.extract_strided_slice %145 {offsets = [0, 20], sizes = [3, 16], strides = [1, 1]} : vector<3x320xf32> to vector<3x16xf32>
    %c0_149 = arith.constant 0 : index
    %c0_150 = arith.constant 0 : index
    %c16 = arith.constant 16 : index
    %172 = vector.load %arg10[%c0_149, %c0_150, %c16] : memref<1x3x256xf32, #tpu.memory_space<vmem>>, vector<1x3x16xf32>
    %173 = vector.shape_cast %172 : vector<1x3x16xf32> to vector<3x16xf32>
    %174 = vector.shape_cast %171 : vector<3x16xf32> to vector<1x3x16xf32>
    tpu.vector_store %arg10[%c0_149, %c0_150, %c16], %174 {strides = array<i32>} : memref<1x3x256xf32, #tpu.memory_space<vmem>>, vector<1x3x16xf32>,
    %175 = vector.extract_strided_slice %154 {offsets = [0, 20], sizes = [3, 16], strides = [1, 1]} : vector<3x320xf32> to vector<3x16xf32>
    %c0_151 = arith.constant 0 : index
    %c0_152 = arith.constant 0 : index
    %c16_153 = arith.constant 16 : index
    %176 = vector.load %arg11[%c0_151, %c0_152, %c16_153] : memref<1x3x256xf32, #tpu.memory_space<vmem>>, vector<1x3x16xf32>
    %177 = vector.shape_cast %176 : vector<1x3x16xf32> to vector<3x16xf32>
    %178 = vector.shape_cast %175 : vector<3x16xf32> to vector<1x3x16xf32>
    tpu.vector_store %arg11[%c0_151, %c0_152, %c16_153], %178 {strides = array<i32>} : memref<1x3x256xf32, #tpu.memory_space<vmem>>, vector<1x3x16xf32>,
    %179 = vector.extract_strided_slice %158 {offsets = [0, 20], sizes = [3, 16], strides = [1, 1]} : vector<3x320xf32> to vector<3x16xf32>
    %c0_154 = arith.constant 0 : index
    %c0_155 = arith.constant 0 : index
    %c16_156 = arith.constant 16 : index
    %180 = vector.load %arg12[%c0_154, %c0_155, %c16_156] : memref<1x3x256xf32, #tpu.memory_space<vmem>>, vector<1x3x16xf32>
    %181 = vector.shape_cast %180 : vector<1x3x16xf32> to vector<3x16xf32>
    %182 = vector.shape_cast %179 : vector<3x16xf32> to vector<1x3x16xf32>
    tpu.vector_store %arg12[%c0_154, %c0_155, %c16_156], %182 {strides = array<i32>} : memref<1x3x256xf32, #tpu.memory_space<vmem>>, vector<1x3x16xf32>,
    %183 = vector.extract_strided_slice %145 {offsets = [0, 40], sizes = [3, 16], strides = [1, 1]} : vector<3x320xf32> to vector<3x16xf32>
    %c0_157 = arith.constant 0 : index
    %c0_158 = arith.constant 0 : index
    %c32 = arith.constant 32 : index
    %184 = vector.load %arg10[%c0_157, %c0_158, %c32] : memref<1x3x256xf32, #tpu.memory_space<vmem>>, vector<1x3x16xf32>
    %185 = vector.shape_cast %184 : vector<1x3x16xf32> to vector<3x16xf32>
    %186 = vector.shape_cast %183 : vector<3x16xf32> to vector<1x3x16xf32>
    tpu.vector_store %arg10[%c0_157, %c0_158, %c32], %186 {strides = array<i32>} : memref<1x3x256xf32, #tpu.memory_space<vmem>>, vector<1x3x16xf32>,
    %187 = vector.extract_strided_slice %154 {offsets = [0, 40], sizes = [3, 16], strides = [1, 1]} : vector<3x320xf32> to vector<3x16xf32>
    %c0_159 = arith.constant 0 : index
    %c0_160 = arith.constant 0 : index
    %c32_161 = arith.constant 32 : index
    %188 = vector.load %arg11[%c0_159, %c0_160, %c32_161] : memref<1x3x256xf32, #tpu.memory_space<vmem>>, vector<1x3x16xf32>
    %189 = vector.shape_cast %188 : vector<1x3x16xf32> to vector<3x16xf32>
    %190 = vector.shape_cast %187 : vector<3x16xf32> to vector<1x3x16xf32>
    tpu.vector_store %arg11[%c0_159, %c0_160, %c32_161], %190 {strides = array<i32>} : memref<1x3x256xf32, #tpu.memory_space<vmem>>, vector<1x3x16xf32>,
    %191 = vector.extract_strided_slice %158 {offsets = [0, 40], sizes = [3, 16], strides = [1, 1]} : vector<3x320xf32> to vector<3x16xf32>
    %c0_162 = arith.constant 0 : index
    %c0_163 = arith.constant 0 : index
    %c32_164 = arith.constant 32 : index
    %192 = vector.load %arg12[%c0_162, %c0_163, %c32_164] : memref<1x3x256xf32, #tpu.memory_space<vmem>>, vector<1x3x16xf32>
    %193 = vector.shape_cast %192 : vector<1x3x16xf32> to vector<3x16xf32>
    %194 = vector.shape_cast %191 : vector<3x16xf32> to vector<1x3x16xf32>
    tpu.vector_store %arg12[%c0_162, %c0_163, %c32_164], %194 {strides = array<i32>} : memref<1x3x256xf32, #tpu.memory_space<vmem>>, vector<1x3x16xf32>,
    %195 = vector.extract_strided_slice %145 {offsets = [0, 60], sizes = [3, 16], strides = [1, 1]} : vector<3x320xf32> to vector<3x16xf32>
    %c0_165 = arith.constant 0 : index
    %c0_166 = arith.constant 0 : index
    %c48 = arith.constant 48 : index
    %196 = vector.load %arg10[%c0_165, %c0_166, %c48] : memref<1x3x256xf32, #tpu.memory_space<vmem>>, vector<1x3x16xf32>
    %197 = vector.shape_cast %196 : vector<1x3x16xf32> to vector<3x16xf32>
    %198 = vector.shape_cast %195 : vector<3x16xf32> to vector<1x3x16xf32>
    tpu.vector_store %arg10[%c0_165, %c0_166, %c48], %198 {strides = array<i32>} : memref<1x3x256xf32, #tpu.memory_space<vmem>>, vector<1x3x16xf32>,
    %199 = vector.extract_strided_slice %154 {offsets = [0, 60], sizes = [3, 16], strides = [1, 1]} : vector<3x320xf32> to vector<3x16xf32>
    %c0_167 = arith.constant 0 : index
    %c0_168 = arith.constant 0 : index
    %c48_169 = arith.constant 48 : index
    %200 = vector.load %arg11[%c0_167, %c0_168, %c48_169] : memref<1x3x256xf32, #tpu.memory_space<vmem>>, vector<1x3x16xf32>
    %201 = vector.shape_cast %200 : vector<1x3x16xf32> to vector<3x16xf32>
    %202 = vector.shape_cast %199 : vector<3x16xf32> to vector<1x3x16xf32>
    tpu.vector_store %arg11[%c0_167, %c0_168, %c48_169], %202 {strides = array<i32>} : memref<1x3x256xf32, #tpu.memory_space<vmem>>, vector<1x3x16xf32>,
    %203 = vector.extract_strided_slice %158 {offsets = [0, 60], sizes = [3, 16], strides = [1, 1]} : vector<3x320xf32> to vector<3x16xf32>
    %c0_170 = arith.constant 0 : index
    %c0_171 = arith.constant 0 : index
    %c48_172 = arith.constant 48 : index
    %204 = vector.load %arg12[%c0_170, %c0_171, %c48_172] : memref<1x3x256xf32, #tpu.memory_space<vmem>>, vector<1x3x16xf32>
    %205 = vector.shape_cast %204 : vector<1x3x16xf32> to vector<3x16xf32>
    %206 = vector.shape_cast %203 : vector<3x16xf32> to vector<1x3x16xf32>
    tpu.vector_store %arg12[%c0_170, %c0_171, %c48_172], %206 {strides = array<i32>} : memref<1x3x256xf32, #tpu.memory_space<vmem>>, vector<1x3x16xf32>,
    %207 = vector.extract_strided_slice %145 {offsets = [0, 80], sizes = [3, 16], strides = [1, 1]} : vector<3x320xf32> to vector<3x16xf32>
    %c0_173 = arith.constant 0 : index
    %c0_174 = arith.constant 0 : index
    %c64 = arith.constant 64 : index
    %208 = vector.load %arg10[%c0_173, %c0_174, %c64] : memref<1x3x256xf32, #tpu.memory_space<vmem>>, vector<1x3x16xf32>
    %209 = vector.shape_cast %208 : vector<1x3x16xf32> to vector<3x16xf32>
    %210 = vector.shape_cast %207 : vector<3x16xf32> to vector<1x3x16xf32>
    tpu.vector_store %arg10[%c0_173, %c0_174, %c64], %210 {strides = array<i32>} : memref<1x3x256xf32, #tpu.memory_space<vmem>>, vector<1x3x16xf32>,
    %211 = vector.extract_strided_slice %154 {offsets = [0, 80], sizes = [3, 16], strides = [1, 1]} : vector<3x320xf32> to vector<3x16xf32>
    %c0_175 = arith.constant 0 : index
    %c0_176 = arith.constant 0 : index
    %c64_177 = arith.constant 64 : index
    %212 = vector.load %arg11[%c0_175, %c0_176, %c64_177] : memref<1x3x256xf32, #tpu.memory_space<vmem>>, vector<1x3x16xf32>
    %213 = vector.shape_cast %212 : vector<1x3x16xf32> to vector<3x16xf32>
    %214 = vector.shape_cast %211 : vector<3x16xf32> to vector<1x3x16xf32>
    tpu.vector_store %arg11[%c0_175, %c0_176, %c64_177], %214 {strides = array<i32>} : memref<1x3x256xf32, #tpu.memory_space<vmem>>, vector<1x3x16xf32>,
    %215 = vector.extract_strided_slice %158 {offsets = [0, 80], sizes = [3, 16], strides = [1, 1]} : vector<3x320xf32> to vector<3x16xf32>
    %c0_178 = arith.constant 0 : index
    %c0_179 = arith.constant 0 : index
    %c64_180 = arith.constant 64 : index
    %216 = vector.load %arg12[%c0_178, %c0_179, %c64_180] : memref<1x3x256xf32, #tpu.memory_space<vmem>>, vector<1x3x16xf32>
    %217 = vector.shape_cast %216 : vector<1x3x16xf32> to vector<3x16xf32>
    %218 = vector.shape_cast %215 : vector<3x16xf32> to vector<1x3x16xf32>
    tpu.vector_store %arg12[%c0_178, %c0_179, %c64_180], %218 {strides = array<i32>} : memref<1x3x256xf32, #tpu.memory_space<vmem>>, vector<1x3x16xf32>,
    %219 = vector.extract_strided_slice %145 {offsets = [0, 100], sizes = [3, 16], strides = [1, 1]} : vector<3x320xf32> to vector<3x16xf32>
    %c0_181 = arith.constant 0 : index
    %c0_182 = arith.constant 0 : index
    %c80 = arith.constant 80 : index
    %220 = vector.load %arg10[%c0_181, %c0_182, %c80] : memref<1x3x256xf32, #tpu.memory_space<vmem>>, vector<1x3x16xf32>
    %221 = vector.shape_cast %220 : vector<1x3x16xf32> to vector<3x16xf32>
    %222 = vector.shape_cast %219 : vector<3x16xf32> to vector<1x3x16xf32>
    tpu.vector_store %arg10[%c0_181, %c0_182, %c80], %222 {strides = array<i32>} : memref<1x3x256xf32, #tpu.memory_space<vmem>>, vector<1x3x16xf32>,
    %223 = vector.extract_strided_slice %154 {offsets = [0, 100], sizes = [3, 16], strides = [1, 1]} : vector<3x320xf32> to vector<3x16xf32>
    %c0_183 = arith.constant 0 : index
    %c0_184 = arith.constant 0 : index
    %c80_185 = arith.constant 80 : index
    %224 = vector.load %arg11[%c0_183, %c0_184, %c80_185] : memref<1x3x256xf32, #tpu.memory_space<vmem>>, vector<1x3x16xf32>
    %225 = vector.shape_cast %224 : vector<1x3x16xf32> to vector<3x16xf32>
    %226 = vector.shape_cast %223 : vector<3x16xf32> to vector<1x3x16xf32>
    tpu.vector_store %arg11[%c0_183, %c0_184, %c80_185], %226 {strides = array<i32>} : memref<1x3x256xf32, #tpu.memory_space<vmem>>, vector<1x3x16xf32>,
    %227 = vector.extract_strided_slice %158 {offsets = [0, 100], sizes = [3, 16], strides = [1, 1]} : vector<3x320xf32> to vector<3x16xf32>
    %c0_186 = arith.constant 0 : index
    %c0_187 = arith.constant 0 : index
    %c80_188 = arith.constant 80 : index
    %228 = vector.load %arg12[%c0_186, %c0_187, %c80_188] : memref<1x3x256xf32, #tpu.memory_space<vmem>>, vector<1x3x16xf32>
    %229 = vector.shape_cast %228 : vector<1x3x16xf32> to vector<3x16xf32>
    %230 = vector.shape_cast %227 : vector<3x16xf32> to vector<1x3x16xf32>
    tpu.vector_store %arg12[%c0_186, %c0_187, %c80_188], %230 {strides = array<i32>} : memref<1x3x256xf32, #tpu.memory_space<vmem>>, vector<1x3x16xf32>,
    %231 = vector.extract_strided_slice %145 {offsets = [0, 120], sizes = [3, 16], strides = [1, 1]} : vector<3x320xf32> to vector<3x16xf32>
    %c0_189 = arith.constant 0 : index
    %c0_190 = arith.constant 0 : index
    %c96 = arith.constant 96 : index
    %232 = vector.load %arg10[%c0_189, %c0_190, %c96] : memref<1x3x256xf32, #tpu.memory_space<vmem>>, vector<1x3x16xf32>
    %233 = vector.shape_cast %232 : vector<1x3x16xf32> to vector<3x16xf32>
    %234 = vector.shape_cast %231 : vector<3x16xf32> to vector<1x3x16xf32>
    tpu.vector_store %arg10[%c0_189, %c0_190, %c96], %234 {strides = array<i32>} : memref<1x3x256xf32, #tpu.memory_space<vmem>>, vector<1x3x16xf32>,
    %235 = vector.extract_strided_slice %154 {offsets = [0, 120], sizes = [3, 16], strides = [1, 1]} : vector<3x320xf32> to vector<3x16xf32>
    %c0_191 = arith.constant 0 : index
    %c0_192 = arith.constant 0 : index
    %c96_193 = arith.constant 96 : index
    %236 = vector.load %arg11[%c0_191, %c0_192, %c96_193] : memref<1x3x256xf32, #tpu.memory_space<vmem>>, vector<1x3x16xf32>
    %237 = vector.shape_cast %236 : vector<1x3x16xf32> to vector<3x16xf32>
    %238 = vector.shape_cast %235 : vector<3x16xf32> to vector<1x3x16xf32>
    tpu.vector_store %arg11[%c0_191, %c0_192, %c96_193], %238 {strides = array<i32>} : memref<1x3x256xf32, #tpu.memory_space<vmem>>, vector<1x3x16xf32>,
    %239 = vector.extract_strided_slice %158 {offsets = [0, 120], sizes = [3, 16], strides = [1, 1]} : vector<3x320xf32> to vector<3x16xf32>
    %c0_194 = arith.constant 0 : index
    %c0_195 = arith.constant 0 : index
    %c96_196 = arith.constant 96 : index
    %240 = vector.load %arg12[%c0_194, %c0_195, %c96_196] : memref<1x3x256xf32, #tpu.memory_space<vmem>>, vector<1x3x16xf32>
    %241 = vector.shape_cast %240 : vector<1x3x16xf32> to vector<3x16xf32>
    %242 = vector.shape_cast %239 : vector<3x16xf32> to vector<1x3x16xf32>
    tpu.vector_store %arg12[%c0_194, %c0_195, %c96_196], %242 {strides = array<i32>} : memref<1x3x256xf32, #tpu.memory_space<vmem>>, vector<1x3x16xf32>,
    %243 = vector.extract_strided_slice %145 {offsets = [0, 140], sizes = [3, 16], strides = [1, 1]} : vector<3x320xf32> to vector<3x16xf32>
    %c0_197 = arith.constant 0 : index
    %c0_198 = arith.constant 0 : index
    %c112 = arith.constant 112 : index
    %244 = vector.load %arg10[%c0_197, %c0_198, %c112] : memref<1x3x256xf32, #tpu.memory_space<vmem>>, vector<1x3x16xf32>
    %245 = vector.shape_cast %244 : vector<1x3x16xf32> to vector<3x16xf32>
    %246 = vector.shape_cast %243 : vector<3x16xf32> to vector<1x3x16xf32>
    tpu.vector_store %arg10[%c0_197, %c0_198, %c112], %246 {strides = array<i32>} : memref<1x3x256xf32, #tpu.memory_space<vmem>>, vector<1x3x16xf32>,
    %247 = vector.extract_strided_slice %154 {offsets = [0, 140], sizes = [3, 16], strides = [1, 1]} : vector<3x320xf32> to vector<3x16xf32>
    %c0_199 = arith.constant 0 : index
    %c0_200 = arith.constant 0 : index
    %c112_201 = arith.constant 112 : index
    %248 = vector.load %arg11[%c0_199, %c0_200, %c112_201] : memref<1x3x256xf32, #tpu.memory_space<vmem>>, vector<1x3x16xf32>
    %249 = vector.shape_cast %248 : vector<1x3x16xf32> to vector<3x16xf32>
    %250 = vector.shape_cast %247 : vector<3x16xf32> to vector<1x3x16xf32>
    tpu.vector_store %arg11[%c0_199, %c0_200, %c112_201], %250 {strides = array<i32>} : memref<1x3x256xf32, #tpu.memory_space<vmem>>, vector<1x3x16xf32>,
    %251 = vector.extract_strided_slice %158 {offsets = [0, 140], sizes = [3, 16], strides = [1, 1]} : vector<3x320xf32> to vector<3x16xf32>
    %c0_202 = arith.constant 0 : index
    %c0_203 = arith.constant 0 : index
    %c112_204 = arith.constant 112 : index
    %252 = vector.load %arg12[%c0_202, %c0_203, %c112_204] : memref<1x3x256xf32, #tpu.memory_space<vmem>>, vector<1x3x16xf32>
    %253 = vector.shape_cast %252 : vector<1x3x16xf32> to vector<3x16xf32>
    %254 = vector.shape_cast %251 : vector<3x16xf32> to vector<1x3x16xf32>
    tpu.vector_store %arg12[%c0_202, %c0_203, %c112_204], %254 {strides = array<i32>} : memref<1x3x256xf32, #tpu.memory_space<vmem>>, vector<1x3x16xf32>,
    %255 = vector.extract_strided_slice %145 {offsets = [0, 160], sizes = [3, 16], strides = [1, 1]} : vector<3x320xf32> to vector<3x16xf32>
    %c0_205 = arith.constant 0 : index
    %c0_206 = arith.constant 0 : index
    %c128 = arith.constant 128 : index
    %256 = vector.load %arg10[%c0_205, %c0_206, %c128] : memref<1x3x256xf32, #tpu.memory_space<vmem>>, vector<1x3x16xf32>
    %257 = vector.shape_cast %256 : vector<1x3x16xf32> to vector<3x16xf32>
    %258 = vector.shape_cast %255 : vector<3x16xf32> to vector<1x3x16xf32>
    tpu.vector_store %arg10[%c0_205, %c0_206, %c128], %258 {strides = array<i32>} : memref<1x3x256xf32, #tpu.memory_space<vmem>>, vector<1x3x16xf32>,
    %259 = vector.extract_strided_slice %154 {offsets = [0, 160], sizes = [3, 16], strides = [1, 1]} : vector<3x320xf32> to vector<3x16xf32>
    %c0_207 = arith.constant 0 : index
    %c0_208 = arith.constant 0 : index
    %c128_209 = arith.constant 128 : index
    %260 = vector.load %arg11[%c0_207, %c0_208, %c128_209] : memref<1x3x256xf32, #tpu.memory_space<vmem>>, vector<1x3x16xf32>
    %261 = vector.shape_cast %260 : vector<1x3x16xf32> to vector<3x16xf32>
    %262 = vector.shape_cast %259 : vector<3x16xf32> to vector<1x3x16xf32>
    tpu.vector_store %arg11[%c0_207, %c0_208, %c128_209], %262 {strides = array<i32>} : memref<1x3x256xf32, #tpu.memory_space<vmem>>, vector<1x3x16xf32>,
    %263 = vector.extract_strided_slice %158 {offsets = [0, 160], sizes = [3, 16], strides = [1, 1]} : vector<3x320xf32> to vector<3x16xf32>
    %c0_210 = arith.constant 0 : index
    %c0_211 = arith.constant 0 : index
    %c128_212 = arith.constant 128 : index
    %264 = vector.load %arg12[%c0_210, %c0_211, %c128_212] : memref<1x3x256xf32, #tpu.memory_space<vmem>>, vector<1x3x16xf32>
    %265 = vector.shape_cast %264 : vector<1x3x16xf32> to vector<3x16xf32>
    %266 = vector.shape_cast %263 : vector<3x16xf32> to vector<1x3x16xf32>
    tpu.vector_store %arg12[%c0_210, %c0_211, %c128_212], %266 {strides = array<i32>} : memref<1x3x256xf32, #tpu.memory_space<vmem>>, vector<1x3x16xf32>,
    %267 = vector.extract_strided_slice %145 {offsets = [0, 180], sizes = [3, 16], strides = [1, 1]} : vector<3x320xf32> to vector<3x16xf32>
    %c0_213 = arith.constant 0 : index
    %c0_214 = arith.constant 0 : index
    %c144 = arith.constant 144 : index
    %268 = vector.load %arg10[%c0_213, %c0_214, %c144] : memref<1x3x256xf32, #tpu.memory_space<vmem>>, vector<1x3x16xf32>
    %269 = vector.shape_cast %268 : vector<1x3x16xf32> to vector<3x16xf32>
    %270 = vector.shape_cast %267 : vector<3x16xf32> to vector<1x3x16xf32>
    tpu.vector_store %arg10[%c0_213, %c0_214, %c144], %270 {strides = array<i32>} : memref<1x3x256xf32, #tpu.memory_space<vmem>>, vector<1x3x16xf32>,
    %271 = vector.extract_strided_slice %154 {offsets = [0, 180], sizes = [3, 16], strides = [1, 1]} : vector<3x320xf32> to vector<3x16xf32>
    %c0_215 = arith.constant 0 : index
    %c0_216 = arith.constant 0 : index
    %c144_217 = arith.constant 144 : index
    %272 = vector.load %arg11[%c0_215, %c0_216, %c144_217] : memref<1x3x256xf32, #tpu.memory_space<vmem>>, vector<1x3x16xf32>
    %273 = vector.shape_cast %272 : vector<1x3x16xf32> to vector<3x16xf32>
    %274 = vector.shape_cast %271 : vector<3x16xf32> to vector<1x3x16xf32>
    tpu.vector_store %arg11[%c0_215, %c0_216, %c144_217], %274 {strides = array<i32>} : memref<1x3x256xf32, #tpu.memory_space<vmem>>, vector<1x3x16xf32>,
    %275 = vector.extract_strided_slice %158 {offsets = [0, 180], sizes = [3, 16], strides = [1, 1]} : vector<3x320xf32> to vector<3x16xf32>
    %c0_218 = arith.constant 0 : index
    %c0_219 = arith.constant 0 : index
    %c144_220 = arith.constant 144 : index
    %276 = vector.load %arg12[%c0_218, %c0_219, %c144_220] : memref<1x3x256xf32, #tpu.memory_space<vmem>>, vector<1x3x16xf32>
    %277 = vector.shape_cast %276 : vector<1x3x16xf32> to vector<3x16xf32>
    %278 = vector.shape_cast %275 : vector<3x16xf32> to vector<1x3x16xf32>
    tpu.vector_store %arg12[%c0_218, %c0_219, %c144_220], %278 {strides = array<i32>} : memref<1x3x256xf32, #tpu.memory_space<vmem>>, vector<1x3x16xf32>,
    %279 = vector.extract_strided_slice %145 {offsets = [0, 200], sizes = [3, 16], strides = [1, 1]} : vector<3x320xf32> to vector<3x16xf32>
    %c0_221 = arith.constant 0 : index
    %c0_222 = arith.constant 0 : index
    %c160 = arith.constant 160 : index
    %280 = vector.load %arg10[%c0_221, %c0_222, %c160] : memref<1x3x256xf32, #tpu.memory_space<vmem>>, vector<1x3x16xf32>
    %281 = vector.shape_cast %280 : vector<1x3x16xf32> to vector<3x16xf32>
    %282 = vector.shape_cast %279 : vector<3x16xf32> to vector<1x3x16xf32>
    tpu.vector_store %arg10[%c0_221, %c0_222, %c160], %282 {strides = array<i32>} : memref<1x3x256xf32, #tpu.memory_space<vmem>>, vector<1x3x16xf32>,
    %283 = vector.extract_strided_slice %154 {offsets = [0, 200], sizes = [3, 16], strides = [1, 1]} : vector<3x320xf32> to vector<3x16xf32>
    %c0_223 = arith.constant 0 : index
    %c0_224 = arith.constant 0 : index
    %c160_225 = arith.constant 160 : index
    %284 = vector.load %arg11[%c0_223, %c0_224, %c160_225] : memref<1x3x256xf32, #tpu.memory_space<vmem>>, vector<1x3x16xf32>
    %285 = vector.shape_cast %284 : vector<1x3x16xf32> to vector<3x16xf32>
    %286 = vector.shape_cast %283 : vector<3x16xf32> to vector<1x3x16xf32>
    tpu.vector_store %arg11[%c0_223, %c0_224, %c160_225], %286 {strides = array<i32>} : memref<1x3x256xf32, #tpu.memory_space<vmem>>, vector<1x3x16xf32>,
    %287 = vector.extract_strided_slice %158 {offsets = [0, 200], sizes = [3, 16], strides = [1, 1]} : vector<3x320xf32> to vector<3x16xf32>
    %c0_226 = arith.constant 0 : index
    %c0_227 = arith.constant 0 : index
    %c160_228 = arith.constant 160 : index
    %288 = vector.load %arg12[%c0_226, %c0_227, %c160_228] : memref<1x3x256xf32, #tpu.memory_space<vmem>>, vector<1x3x16xf32>
    %289 = vector.shape_cast %288 : vector<1x3x16xf32> to vector<3x16xf32>
    %290 = vector.shape_cast %287 : vector<3x16xf32> to vector<1x3x16xf32>
    tpu.vector_store %arg12[%c0_226, %c0_227, %c160_228], %290 {strides = array<i32>} : memref<1x3x256xf32, #tpu.memory_space<vmem>>, vector<1x3x16xf32>,
    %291 = vector.extract_strided_slice %145 {offsets = [0, 220], sizes = [3, 16], strides = [1, 1]} : vector<3x320xf32> to vector<3x16xf32>
    %c0_229 = arith.constant 0 : index
    %c0_230 = arith.constant 0 : index
    %c176 = arith.constant 176 : index
    %292 = vector.load %arg10[%c0_229, %c0_230, %c176] : memref<1x3x256xf32, #tpu.memory_space<vmem>>, vector<1x3x16xf32>
    %293 = vector.shape_cast %292 : vector<1x3x16xf32> to vector<3x16xf32>
    %294 = vector.shape_cast %291 : vector<3x16xf32> to vector<1x3x16xf32>
    tpu.vector_store %arg10[%c0_229, %c0_230, %c176], %294 {strides = array<i32>} : memref<1x3x256xf32, #tpu.memory_space<vmem>>, vector<1x3x16xf32>,
    %295 = vector.extract_strided_slice %154 {offsets = [0, 220], sizes = [3, 16], strides = [1, 1]} : vector<3x320xf32> to vector<3x16xf32>
    %c0_231 = arith.constant 0 : index
    %c0_232 = arith.constant 0 : index
    %c176_233 = arith.constant 176 : index
    %296 = vector.load %arg11[%c0_231, %c0_232, %c176_233] : memref<1x3x256xf32, #tpu.memory_space<vmem>>, vector<1x3x16xf32>
    %297 = vector.shape_cast %296 : vector<1x3x16xf32> to vector<3x16xf32>
    %298 = vector.shape_cast %295 : vector<3x16xf32> to vector<1x3x16xf32>
    tpu.vector_store %arg11[%c0_231, %c0_232, %c176_233], %298 {strides = array<i32>} : memref<1x3x256xf32, #tpu.memory_space<vmem>>, vector<1x3x16xf32>,
    %299 = vector.extract_strided_slice %158 {offsets = [0, 220], sizes = [3, 16], strides = [1, 1]} : vector<3x320xf32> to vector<3x16xf32>
    %c0_234 = arith.constant 0 : index
    %c0_235 = arith.constant 0 : index
    %c176_236 = arith.constant 176 : index
    %300 = vector.load %arg12[%c0_234, %c0_235, %c176_236] : memref<1x3x256xf32, #tpu.memory_space<vmem>>, vector<1x3x16xf32>
    %301 = vector.shape_cast %300 : vector<1x3x16xf32> to vector<3x16xf32>
    %302 = vector.shape_cast %299 : vector<3x16xf32> to vector<1x3x16xf32>
    tpu.vector_store %arg12[%c0_234, %c0_235, %c176_236], %302 {strides = array<i32>} : memref<1x3x256xf32, #tpu.memory_space<vmem>>, vector<1x3x16xf32>,
    %303 = vector.extract_strided_slice %145 {offsets = [0, 240], sizes = [3, 16], strides = [1, 1]} : vector<3x320xf32> to vector<3x16xf32>
    %c0_237 = arith.constant 0 : index
    %c0_238 = arith.constant 0 : index
    %c192 = arith.constant 192 : index
    %304 = vector.load %arg10[%c0_237, %c0_238, %c192] : memref<1x3x256xf32, #tpu.memory_space<vmem>>, vector<1x3x16xf32>
    %305 = vector.shape_cast %304 : vector<1x3x16xf32> to vector<3x16xf32>
    %306 = vector.shape_cast %303 : vector<3x16xf32> to vector<1x3x16xf32>
    tpu.vector_store %arg10[%c0_237, %c0_238, %c192], %306 {strides = array<i32>} : memref<1x3x256xf32, #tpu.memory_space<vmem>>, vector<1x3x16xf32>,
    %307 = vector.extract_strided_slice %154 {offsets = [0, 240], sizes = [3, 16], strides = [1, 1]} : vector<3x320xf32> to vector<3x16xf32>
    %c0_239 = arith.constant 0 : index
    %c0_240 = arith.constant 0 : index
    %c192_241 = arith.constant 192 : index
    %308 = vector.load %arg11[%c0_239, %c0_240, %c192_241] : memref<1x3x256xf32, #tpu.memory_space<vmem>>, vector<1x3x16xf32>
    %309 = vector.shape_cast %308 : vector<1x3x16xf32> to vector<3x16xf32>
    %310 = vector.shape_cast %307 : vector<3x16xf32> to vector<1x3x16xf32>
    tpu.vector_store %arg11[%c0_239, %c0_240, %c192_241], %310 {strides = array<i32>} : memref<1x3x256xf32, #tpu.memory_space<vmem>>, vector<1x3x16xf32>,
    %311 = vector.extract_strided_slice %158 {offsets = [0, 240], sizes = [3, 16], strides = [1, 1]} : vector<3x320xf32> to vector<3x16xf32>
    %c0_242 = arith.constant 0 : index
    %c0_243 = arith.constant 0 : index
    %c192_244 = arith.constant 192 : index
    %312 = vector.load %arg12[%c0_242, %c0_243, %c192_244] : memref<1x3x256xf32, #tpu.memory_space<vmem>>, vector<1x3x16xf32>
    %313 = vector.shape_cast %312 : vector<1x3x16xf32> to vector<3x16xf32>
    %314 = vector.shape_cast %311 : vector<3x16xf32> to vector<1x3x16xf32>
    tpu.vector_store %arg12[%c0_242, %c0_243, %c192_244], %314 {strides = array<i32>} : memref<1x3x256xf32, #tpu.memory_space<vmem>>, vector<1x3x16xf32>,
    %315 = vector.extract_strided_slice %145 {offsets = [0, 260], sizes = [3, 16], strides = [1, 1]} : vector<3x320xf32> to vector<3x16xf32>
    %c0_245 = arith.constant 0 : index
    %c0_246 = arith.constant 0 : index
    %c208 = arith.constant 208 : index
    %316 = vector.load %arg10[%c0_245, %c0_246, %c208] : memref<1x3x256xf32, #tpu.memory_space<vmem>>, vector<1x3x16xf32>
    %317 = vector.shape_cast %316 : vector<1x3x16xf32> to vector<3x16xf32>
    %318 = vector.shape_cast %315 : vector<3x16xf32> to vector<1x3x16xf32>
    tpu.vector_store %arg10[%c0_245, %c0_246, %c208], %318 {strides = array<i32>} : memref<1x3x256xf32, #tpu.memory_space<vmem>>, vector<1x3x16xf32>,
    %319 = vector.extract_strided_slice %154 {offsets = [0, 260], sizes = [3, 16], strides = [1, 1]} : vector<3x320xf32> to vector<3x16xf32>
    %c0_247 = arith.constant 0 : index
    %c0_248 = arith.constant 0 : index
    %c208_249 = arith.constant 208 : index
    %320 = vector.load %arg11[%c0_247, %c0_248, %c208_249] : memref<1x3x256xf32, #tpu.memory_space<vmem>>, vector<1x3x16xf32>
    %321 = vector.shape_cast %320 : vector<1x3x16xf32> to vector<3x16xf32>
    %322 = vector.shape_cast %319 : vector<3x16xf32> to vector<1x3x16xf32>
    tpu.vector_store %arg11[%c0_247, %c0_248, %c208_249], %322 {strides = array<i32>} : memref<1x3x256xf32, #tpu.memory_space<vmem>>, vector<1x3x16xf32>,
    %323 = vector.extract_strided_slice %158 {offsets = [0, 260], sizes = [3, 16], strides = [1, 1]} : vector<3x320xf32> to vector<3x16xf32>
    %c0_250 = arith.constant 0 : index
    %c0_251 = arith.constant 0 : index
    %c208_252 = arith.constant 208 : index
    %324 = vector.load %arg12[%c0_250, %c0_251, %c208_252] : memref<1x3x256xf32, #tpu.memory_space<vmem>>, vector<1x3x16xf32>
    %325 = vector.shape_cast %324 : vector<1x3x16xf32> to vector<3x16xf32>
    %326 = vector.shape_cast %323 : vector<3x16xf32> to vector<1x3x16xf32>
    tpu.vector_store %arg12[%c0_250, %c0_251, %c208_252], %326 {strides = array<i32>} : memref<1x3x256xf32, #tpu.memory_space<vmem>>, vector<1x3x16xf32>,
    %327 = vector.extract_strided_slice %145 {offsets = [0, 280], sizes = [3, 16], strides = [1, 1]} : vector<3x320xf32> to vector<3x16xf32>
    %c0_253 = arith.constant 0 : index
    %c0_254 = arith.constant 0 : index
    %c224 = arith.constant 224 : index
    %328 = vector.load %arg10[%c0_253, %c0_254, %c224] : memref<1x3x256xf32, #tpu.memory_space<vmem>>, vector<1x3x16xf32>
    %329 = vector.shape_cast %328 : vector<1x3x16xf32> to vector<3x16xf32>
    %330 = vector.shape_cast %327 : vector<3x16xf32> to vector<1x3x16xf32>
    tpu.vector_store %arg10[%c0_253, %c0_254, %c224], %330 {strides = array<i32>} : memref<1x3x256xf32, #tpu.memory_space<vmem>>, vector<1x3x16xf32>,
    %331 = vector.extract_strided_slice %154 {offsets = [0, 280], sizes = [3, 16], strides = [1, 1]} : vector<3x320xf32> to vector<3x16xf32>
    %c0_255 = arith.constant 0 : index
    %c0_256 = arith.constant 0 : index
    %c224_257 = arith.constant 224 : index
    %332 = vector.load %arg11[%c0_255, %c0_256, %c224_257] : memref<1x3x256xf32, #tpu.memory_space<vmem>>, vector<1x3x16xf32>
    %333 = vector.shape_cast %332 : vector<1x3x16xf32> to vector<3x16xf32>
    %334 = vector.shape_cast %331 : vector<3x16xf32> to vector<1x3x16xf32>
    tpu.vector_store %arg11[%c0_255, %c0_256, %c224_257], %334 {strides = array<i32>} : memref<1x3x256xf32, #tpu.memory_space<vmem>>, vector<1x3x16xf32>,
    %335 = vector.extract_strided_slice %158 {offsets = [0, 280], sizes = [3, 16], strides = [1, 1]} : vector<3x320xf32> to vector<3x16xf32>
    %c0_258 = arith.constant 0 : index
    %c0_259 = arith.constant 0 : index
    %c224_260 = arith.constant 224 : index
    %336 = vector.load %arg12[%c0_258, %c0_259, %c224_260] : memref<1x3x256xf32, #tpu.memory_space<vmem>>, vector<1x3x16xf32>
    %337 = vector.shape_cast %336 : vector<1x3x16xf32> to vector<3x16xf32>
    %338 = vector.shape_cast %335 : vector<3x16xf32> to vector<1x3x16xf32>
    tpu.vector_store %arg12[%c0_258, %c0_259, %c224_260], %338 {strides = array<i32>} : memref<1x3x256xf32, #tpu.memory_space<vmem>>, vector<1x3x16xf32>,
    %339 = vector.extract_strided_slice %145 {offsets = [0, 300], sizes = [3, 16], strides = [1, 1]} : vector<3x320xf32> to vector<3x16xf32>
    %c0_261 = arith.constant 0 : index
    %c0_262 = arith.constant 0 : index
    %c240 = arith.constant 240 : index
    %340 = vector.load %arg10[%c0_261, %c0_262, %c240] : memref<1x3x256xf32, #tpu.memory_space<vmem>>, vector<1x3x16xf32>
    %341 = vector.shape_cast %340 : vector<1x3x16xf32> to vector<3x16xf32>
    %342 = vector.shape_cast %339 : vector<3x16xf32> to vector<1x3x16xf32>
    tpu.vector_store %arg10[%c0_261, %c0_262, %c240], %342 {strides = array<i32>} : memref<1x3x256xf32, #tpu.memory_space<vmem>>, vector<1x3x16xf32>,
    %343 = vector.extract_strided_slice %154 {offsets = [0, 300], sizes = [3, 16], strides = [1, 1]} : vector<3x320xf32> to vector<3x16xf32>
    %c0_263 = arith.constant 0 : index
    %c0_264 = arith.constant 0 : index
    %c240_265 = arith.constant 240 : index
    %344 = vector.load %arg11[%c0_263, %c0_264, %c240_265] : memref<1x3x256xf32, #tpu.memory_space<vmem>>, vector<1x3x16xf32>
    %345 = vector.shape_cast %344 : vector<1x3x16xf32> to vector<3x16xf32>
    %346 = vector.shape_cast %343 : vector<3x16xf32> to vector<1x3x16xf32>
    tpu.vector_store %arg11[%c0_263, %c0_264, %c240_265], %346 {strides = array<i32>} : memref<1x3x256xf32, #tpu.memory_space<vmem>>, vector<1x3x16xf32>,
    %347 = vector.extract_strided_slice %158 {offsets = [0, 300], sizes = [3, 16], strides = [1, 1]} : vector<3x320xf32> to vector<3x16xf32>
    %c0_266 = arith.constant 0 : index
    %c0_267 = arith.constant 0 : index
    %c240_268 = arith.constant 240 : index
    %348 = vector.load %arg12[%c0_266, %c0_267, %c240_268] : memref<1x3x256xf32, #tpu.memory_space<vmem>>, vector<1x3x16xf32>
    %349 = vector.shape_cast %348 : vector<1x3x16xf32> to vector<3x16xf32>
    %350 = vector.shape_cast %347 : vector<3x16xf32> to vector<1x3x16xf32>
    tpu.vector_store %arg12[%c0_266, %c0_267, %c240_268], %350 {strides = array<i32>} : memref<1x3x256xf32, #tpu.memory_space<vmem>>, vector<1x3x16xf32>,
    return
  }
  func.func @transform_0(%arg0: i32, %arg1: i32) -> (i32, i32, i32, i32) {
    %c0_i32 = arith.constant 0 : i32
    %c0_i32_0 = arith.constant 0 : i32
    %c0_i32_1 = arith.constant 0 : i32
    return %arg1, %arg0, %c0_i32, %c0_i32_0 : i32, i32, i32, i32
  }
  func.func @transform_1(%arg0: i32, %arg1: i32) -> (i32, i32, i32) {
    %c0_i32 = arith.constant 0 : i32
    %c0_i32_0 = arith.constant 0 : i32
    %c0_i32_1 = arith.constant 0 : i32
    return %arg0, %c0_i32, %c0_i32_0 : i32, i32, i32
  }
  func.func @transform_2(%arg0: i32, %arg1: i32) -> (i32, i32, i32) {
    %c0_i32 = arith.constant 0 : i32
    %c0_i32_0 = arith.constant 0 : i32
    %c0_i32_1 = arith.constant 0 : i32
    %c0_i32_2 = arith.constant 0 : i32
    return %c0_i32, %c0_i32_0, %c0_i32_1 : i32, i32, i32
  }
  func.func @transform_3(%arg0: i32, %arg1: i32) -> (i32, i32) {
    %c0_i32 = arith.constant 0 : i32
    %c0_i32_0 = arith.constant 0 : i32
    %c0_i32_1 = arith.constant 0 : i32
    return %c0_i32, %c0_i32_0 : i32, i32
  }
  func.func @transform_4(%arg0: i32, %arg1: i32) -> (i32, i32, i32) {
    %c0_i32 = arith.constant 0 : i32
    %c0_i32_0 = arith.constant 0 : i32
    %c0_i32_1 = arith.constant 0 : i32
    %c0_i32_2 = arith.constant 0 : i32
    return %c0_i32, %c0_i32_0, %c0_i32_1 : i32, i32, i32
  }
  func.func @transform_5(%arg0: i32, %arg1: i32) -> (i32, i32) {
    %c0_i32 = arith.constant 0 : i32
    %c0_i32_0 = arith.constant 0 : i32
    %c0_i32_1 = arith.constant 0 : i32
    return %c0_i32, %c0_i32_0 : i32, i32
  }
  func.func @transform_6(%arg0: i32, %arg1: i32) -> (i32, i32) {
    %c0_i32 = arith.constant 0 : i32
    %c0_i32_0 = arith.constant 0 : i32
    %c0_i32_1 = arith.constant 0 : i32
    return %c0_i32, %c0_i32_0 : i32, i32
  }
  func.func @transform_7(%arg0: i32, %arg1: i32) -> (i32, i32) {
    %c0_i32 = arith.constant 0 : i32
    %c0_i32_0 = arith.constant 0 : i32
    %c0_i32_1 = arith.constant 0 : i32
    return %c0_i32, %c0_i32_0 : i32, i32
  }
  func.func @transform_8(%arg0: i32, %arg1: i32) -> (i32, i32, i32) {
    %c0_i32 = arith.constant 0 : i32
    %c0_i32_0 = arith.constant 0 : i32
    return %arg1, %c0_i32, %arg0 : i32, i32, i32
  }
  func.func @transform_9(%arg0: i32, %arg1: i32) -> (i32, i32, i32) {
    %c0_i32 = arith.constant 0 : i32
    %c0_i32_0 = arith.constant 0 : i32
    return %arg1, %c0_i32, %arg0 : i32, i32, i32
  }
  func.func @transform_10(%arg0: i32, %arg1: i32) -> (i32, i32, i32) {
    %c0_i32 = arith.constant 0 : i32
    %c0_i32_0 = arith.constant 0 : i32
    return %arg1, %c0_i32, %arg0 : i32, i32, i32
  }
}

</mosaic_0001>

<bundles_post_ra>
// kernel: wdnet_forward.1
= control target key start
LH: loop header
LB: loop body
LE: loop exit
PB: predicated region body
PF: predicated region fallthrough
CT: control target
= control target key end

     0   :  { %s5601_s13 = smov 0   ;;  %s5603_s14 = smov 0   ;;  %s6548_s0 = inlined_call_operand.vmem [shape: f32[2,1,3,512], index: 0, kind: input, shape index: {}]   ;;  %s6549_s1 = inlined_call_operand.vmem [shape: f32[1,1,360], index: 1, kind: input, shape index: {}]   ;;  %s6550_s2 = inlined_call_operand.vmem [shape: f32[9,16,3], index: 2, kind: input, shape index: {}]   ;;  %s6551_s3 = inlined_call_operand.vmem [shape: f32[16,1], index: 3, kind: input, shape index: {}]   ;;  %s6552_s4 = inlined_call_operand.vmem [shape: f32[9,16,16], index: 4, kind: input, shape index: {}]   ;;  %s6553_s5 = inlined_call_operand.vmem [shape: f32[16,1], index: 5, kind: input, shape index: {}]   ;;  %s6554_s6 = inlined_call_operand.vmem [shape: f32[9,16], index: 6, kind: input, shape index: {}]   ;;  %s6555_s7 = inlined_call_operand.vmem [shape: f32[9,1], index: 7, kind: input, shape index: {}]   ;;  %s6556_s8 = inlined_call_operand.vmem [shape: f32[2,3,256], index: 8, kind: output, shape index: {0}]   ;;  %s6557_s9 = inlined_call_operand.vmem [shape: f32[2,3,256], index: 9, kind: output, shape index: {1}]   ;;  %s6558_s10 = inlined_call_operand.vmem [shape: f32[2,3,256], index: 10, kind: output, shape index: {2}]  }
   0x1   :  { %s5605_s15 = smov 0  }
   0x2 LB: > { %s30_s16 = sadd.s32 1, %s5502_s14  ;;  %p4746_p0 = scmp.ge.s32.totalorder %s5506_s15, 1  ;;  %s5506_s15 = sphi %s5605_s15, %s21_s15   ;;  %s5502_s14 = sphi %s5603_s14, %s6572_s14   ;;  %s5498_s13 = sphi %s5601_s13, %s6571_s13  }
   0x3   : > { %p31_p1 = scmp.ge.s32.totalorder %s30_s16, 2  ;;  %p350_p2 = scmp.lt.s32.totalorder %s5506_s15, 3 }
   0x5   : > { %s6574_s16 = smov (%p31_p1, %s30_s16), 0  ;;  %p351_p3 = pnand %p4746_p0, %p350_p2 }
   0x6   : > { %p418_p4 = scmp.lt.s32.totalorder (!%p351_p3), %s5498_s13, 1  ;;  %v5622_v0 = vld [vmem:[%s6550_s2] sm:$0xff] (!%p351_p3)  ;;  %vm480_vm0 = vcmask (!%p351_p3), 23552   ;;  %v5508_v1 = vmov (!%p351_p3), 0.0   ;;  %vm487_vm1 = vcmask (!%p351_p3), 1042432   ;;  %v5642_v4 = vld [vmem:[%s6550_s2 + $0x8] sm:$0xff] (!%p351_p3) }
   0x7   : > { %354 = sbr.rel (%p351_p3) target bundleno = 1524 (0x5f4), region = 52  ;;  %4976 = vmatprep.mubr.msk.f32.mxu1 (!%p351_p3), %vm480_vm0, %v5622_v0  ;;  %558 = vmatprep.mubr.f32.mxu0 (!%p351_p3), %v5508_v1  ;;  %s5509_s25 = smov (!%p351_p3), 127   ;;  %v5654_v6 = vld [vmem:[%s6550_s2 + $0x20] sm:$0xff] (!%p351_p3)  ;;  %v2132_v31 = vld [vmem:[%s6551_s3 + $0x8] sm:$0xff] (!%p351_p3)  ;;  %v5517_v33 = vmov (!%p351_p3), 0   ;;  %vm477_vm2 = vcmask (!%p351_p3), 1039360  }
   0x8   : > { %s5510_s28 = smov (!%p351_p3), 126   ;;  %s5511_s29 = smov (!%p351_p3), 107   ;;  %v2131_v32 = vld [vmem:[%s6551_s3] sm:$0xff] (!%p351_p3)  ;;  %5323 = vset.pattern.permute.xlu0 (!%p351_p3), %v5517_v33  ;;  %5322 = vset.pattern.permute.xlu1 (!%p351_p3), %v5517_v33  ;;  %v5711_v37 = vld [vmem:[%s6550_s2 + $0x28] sm:$0xff] (!%p351_p3)  ;;  %v5717_v38 = vld [vmem:[%s6550_s2 + $0x30] sm:$0xff] (!%p351_p3)  ;;  %vm824_vm3 = vcmask (!%p351_p3), 1031168  }
   0x9   : > { %s5512_s30 = smov (!%p351_p3), 108   ;;  %s5513_s11 = smov (!%p351_p3), 106   ;;  %v4755_v41 = vld [vmem:[%s6550_s2 + $0x10] sm:$0xff] (!%p351_p3)  ;;  %v4756_v45 = vld [vmem:[%s6550_s2 + $0x18] sm:$0xff] (!%p351_p3)  ;;  %v5752_v48 = vld [vmem:[%s6550_s2 + $0x40] sm:$0xff] (!%p351_p3)  ;;  %vm1011_vm4 = vcmask (!%p351_p3), 883712  }
   0xa   : > { %s6563_s12 = smov (!%p351_p3), 88   ;;  %s5515_s17 = smov (!%p351_p3), 87   ;;  %v5744_v47 = vld [vmem:[%s6550_s2 + $0x38] sm:$0xff] (!%p351_p3)  ;;  %v5776_v55 = vld [vmem:[%s6550_s2 + $0x48] sm:$0xff] (!%p351_p3)  ;;  %v5784_v57 = vld [vmem:[%s6550_s2 + $0x50] sm:$0xff] (!%p351_p3)  ;;  %vm1575_vm5 = vcmask (!%p351_p3), 719872  }
   0xb   : > { %s5516_s18 = smov (!%p351_p3), 86   ;;  %vm1198_vm6 = vcmask (!%p351_p3), 875520   ;;  %vm1766_vm7 = vcmask (!%p351_p3), 711680   ;;  %vm1385_vm8 = vcmask (!%p351_p3), 867328   ;;  %vm1957_vm9 = vcmask (!%p351_p3), 703488   ;;  %s5520_s23 = smov (!%p351_p3), 116  }
   0xc   : > { %vm2180_vm10 = vcmask (!%p351_p3), 850944   ;;  %vm2185_vm11 = vcmask (!%p351_p3), 1048384   ;;  %vm2227_vm12 = vcmask (!%p351_p3), 130048   ;;  %vm4123_vm13 = vcmask (!%p351_p3), 1040384   ;;  %s5522_s24 = smov (!%p351_p3), 112   ;;  %s5524_s26 = smov (!%p351_p3), 78  }
   0xd   : > { %vm4262_vm14 = vcmask (!%p351_p3), 1041408   ;;  %vm4319_vm15 = vcmask (!%p351_p3), 124928   ;;  %s5525_s27 = smov (!%p351_p3), 74   ;;  %s5528_s21 = smov (!%p351_p3), 96  }
   0xe   : > { %s6576_s13 = smov (!%p418_p4, %s5498_s13), 1 }
   0xf   : > { %s4898_s19 = sshll.u32 %s6576_s13, 4  ;;  %s6224_s20 = sshll.u32 %s6576_s13, 3 }
  0x10   : > { %s5633_s22 = scalar_lea.vmem %s6548_s0, %s4898_s19  ;;  %s5527_s19 = smov 46  }
  0x11   : > { %v5636_v2 = vld [vmem:[%s5633_s22] sm:$0x77]  ;;  %v464_v3 = vld [vmem:[%s5633_s22 + $0x8] sm:$0x7]  ;;  %s5529_s13 = smov 54  }
  0x12   : > { %471 = vrot.lane.b32.xlu1 %v5636_v2, %s5509_s25  ;;  %v5648_v5 = vcombine.high %v5636_v2, %v5636_v2  ;;  %4974 = vmatprep.subr.msk.mxu1 %vm487_vm1, %v464_v3  ;;  %v814_v7 = vld [vmem:[%s5633_s22 + $0x8] sm:$0x7]  ;;  %v813_v10 = vld [vmem:[%s5633_s22] sm:$0x77] }
  0x13   : > { %4975 = vmatpush3.msk.msra.mxu1 %vm487_vm1, %v464_v3  ;;  %v1188_v8 = vld [vmem:[%s5633_s22 + $0x8] sm:$0x7]  ;;  %v1000_v11 = vld [vmem:[%s5633_s22] sm:$0x77]  ;;  %v817_v12 = vcombine.high %v813_v10, %v813_v10 }
  0x14   : > { %473 = vrot.lane.b32.xlu0 %v5648_v5, %s5509_s25  ;;  %4977 = vmatmul.mubr.msk.f32.vlgmr.msra.gmra.mrb[0].mxu1 %vm480_vm0, %v5642_v4  ;;  %v1001_v9 = vld [vmem:[%s5633_s22 + $0x8] sm:$0x7]  ;;  %v1004_v13 = vcombine.high %v1000_v11, %v1000_v11  ;;  %v1187_v16 = vld [vmem:[%s5633_s22] sm:$0x77] }
  0x15   : > { %4981 = vmatprep.mubr.msk.f32.mxu1 %vm480_vm0, %v5654_v6  ;;  %v1375_v14 = vld [vmem:[%s5633_s22 + $0x8] sm:$0x7]  ;;  %v1191_v17 = vcombine.high %v1187_v16, %v1187_v16  ;;  %v1374_v20 = vld [vmem:[%s5633_s22] sm:$0x77] }
  0x16   : > { %822 = vrot.lane.b32.xlu1 %v814_v7, %s5510_s28  ;;  %v1562_v15 = vld [vmem:[%s5633_s22 + $0x8] sm:$0x77]  ;;  %v1378_v21 = vcombine.high %v1374_v20, %v1374_v20  ;;  %v1561_v24 = vld [vmem:[%s5633_s22] sm:$0x77] }
  0x17   : > { %v1566_v18 = vcombine.high %v1562_v15, %v1562_v15  ;;  %v1753_v19 = vld [vmem:[%s5633_s22 + $0x8] sm:$0x77]  ;;  %v1565_v25 = vcombine.high %v1561_v24, %v1561_v24  ;;  %v1752_v26 = vld [vmem:[%s5633_s22] sm:$0x77] }
  0x18   : > { %475 = vrot.lane.b32.xlu0 %v464_v3, %s5509_s25  ;;  %v1757_v22 = vcombine.high %v1753_v19, %v1753_v19  ;;  %v1944_v23 = vld [vmem:[%s5633_s22 + $0x8] sm:$0x77]  ;;  %v1756_v28 = vcombine.high %v1752_v26, %v1752_v26  ;;  %v1943_v29 = vld [vmem:[%s5633_s22] sm:$0x77] }
  0x19   : > { %v1948_v27 = vcombine.high %v1944_v23, %v1944_v23  ;;  %v1947_v30 = vcombine.high %v1943_v29, %v1943_v29  ;;  %v5812_v3 = vld [vmem:[%s6550_s2 + $0x60] sm:$0xff] }
  0x1a   : > { %1196 = vrot.lane.b32.xlu1 %v1188_v8, %s5511_s29 }
  0x1c   : > { %1009 = vrot.lane.b32.xlu0 %v1001_v9, %s5512_s30  ;;  %v4808_v9 = vld [vmem:[%s6550_s2 + $0x68] sm:$0xff] }
  0x1e   : > { %818 = vrot.lane.b32.xlu1 %v813_v10, %s5510_s28 }
  0x20   : > { %820 = vrot.lane.b32.xlu0 %v817_v12, %s5510_s28  ;;  %v4816_v12 = vld [vmem:[%s6550_s2 + $0x70] sm:$0xff] }
  0x22   : > { %1007 = vrot.lane.b32.xlu1 %v1004_v13, %s5512_s30 }
  0x24   : > { %1383 = vrot.lane.b32.xlu0 %v1375_v14, %s5513_s11 }
  0x26   : > { %1571 = vrot.lane.b32.xlu1 %v1562_v15, %s6563_s12 }
  0x28   : > { %1005 = vrot.lane.b32.xlu0 %v1000_v11, %s5512_s30 }
  0x2a   : > { %1194 = vrot.lane.b32.xlu1 %v1191_v17, %s5511_s29 }
  0x2c   : > { %1573 = vrot.lane.b32.xlu0 %v1566_v18, %s6563_s12  ;;  %v4817_v18 = vld [vmem:[%s6550_s2 + $0x78] sm:$0xff] }
  0x2e   : > { %1762 = vrot.lane.b32.xlu1 %v1753_v19, %s5515_s17  ;;  %v4825_v19 = vld [vmem:[%s6550_s2 + $0x80] sm:$0xff] }
  0x30   : > { %1192 = vrot.lane.b32.xlu0 %v1187_v16, %s5511_s29 }
  0x32   : > { %1381 = vrot.lane.b32.xlu1 %v1378_v21, %s5513_s11 }
  0x34   : > { %1764 = vrot.lane.b32.xlu0 %v1757_v22, %s5515_s17 }
  0x36   : > { %1953 = vrot.lane.b32.xlu1 %v1944_v23, %s5516_s18 }
  0x38   : > { %1379 = vrot.lane.b32.xlu0 %v1374_v20, %s5513_s11 }
  0x3a   : > { %1569 = vrot.lane.b32.xlu1 %v1565_v25, %s6563_s12 }
  0x3c   : > { %1955 = vrot.lane.b32.xlu0 %v1948_v27, %s5516_s18 }
  0x3e   : > { %1760 = vrot.lane.b32.xlu1 %v1756_v28, %s5515_s17 }
  0x40   : > { %1567 = vrot.lane.b32.xlu0 %v1561_v24, %s6563_s12  ;;  %v4826_v24 = vld [vmem:[%s6550_s2 + $0x88] sm:$0xff] }
  0x42   : > { %1951 = vrot.lane.b32.xlu1 %v1947_v30, %s5516_s18 }
  0x44   : > { %1758 = vrot.lane.b32.xlu0 %v1752_v26, %s5515_s17 }
  0x46   : > { %2135 = vperm.xlu1 %5322, %v2131_v32  }
  0x48   : > { %1949 = vrot.lane.b32.xlu0 %v1943_v29, %s5516_s18 }
  0x4c   : > { %2140 = vperm.xlu0 %5323, %v2132_v31  }
  0x84   : > { %v472_v34 = vpop.permute.xlu1 %471 }
  0x86   : > { %v474_v35 = vpop.permute.xlu0 %473 }
  0x87   : > { %v478_v43 = vsel %vm477_vm2, %v472_v34, %v474_v35  ;;  %v2157_v34 = vlaneseq }
  0x88   : > { %v823_v36 = vpop.permute.xlu1 %822 }
  0x89   : > { %4979 = vmatprep.subr.msk.mxu1 %vm487_vm1, %v823_v36 }
  0x8a   : > { %4980 = vmatpush3.msk.msra.mxu1 %vm487_vm1, %v823_v36  ;;  %v476_v39 = vpop.permute.xlu0 %475 }
  0x8b   : > { %4982 = vmatmul.mubr.msk.f32.vlgmr.msra.gmra.mrb[0].mxu1 %vm480_vm0, %v5711_v37  ;;  %v479_v40 = vsel %vm477_vm2, %v474_v35, %v476_v39  ;;  %v5903_v35 = vshrl.u32 %v2157_v34, 7  ;;  %v6022_v34 = vld [vmem:[%s6552_s4 + $0x8] sm:$0xff] }
  0x8c   : > { %v5726_v42 = vpop.permute.xlu1 %1196  ;;  %4757 = vmatprep.subr.msk.mxu0 %vm487_vm1, %v479_v40  ;;  %4986 = vmatprep.mubr.msk.f32.mxu1 %vm480_vm0, %v5717_v38 }
  0x8d   : > { %4758 = vmatpush1.msk.msra.mxu0 %vm487_vm1, %v478_v43 }
  0x8e   : > { %4759 = vmatmul.mubr.msk.f32.vlgmr.msra.gmra.mrb[0].mxu0 %vm480_vm0, %v4755_v41  ;;  %4969 = vmatprep.subr.msk.mxu0 %vm487_vm1, %v476_v39  ;;  %v1010_v44 = vpop.permute.xlu0 %1009 }
  0x8f   : > { %4970 = vmatpush3.msk.msra.mxu0 %vm487_vm1, %v476_v39  ;;  %564 = vmatprep.mubr.f32.mxu0 %v5508_v1 }
  0x90   : > { %v819_v46 = vpop.permute.xlu1 %818  ;;  %4984 = vmatprep.subr.msk.mxu1 %vm487_vm1, %v1010_v44  ;;  %4764 = vmatprep.subr.msk.mxu0 %vm487_vm1, %v5648_v5 }
  0x91   : > { %4985 = vmatpush3.msk.msra.mxu1 %vm487_vm1, %v1010_v44 }
  0x92   : > { %4760 = vmatmul.mubr.msk.f32.gmra.mrb[2].mxu0 %vm480_vm0, %v4756_v45  ;;  %v821_v49 = vpop.permute.xlu0 %820  ;;  %4989 = vmatprep.subr.msk.mxu1 %vm487_vm1, %v5726_v42 }
  0x93   : > { %4987 = vmatmul.mubr.msk.f32.vlgmr.msra.gmra.mrb[0].mxu1 %vm480_vm0, %v5744_v47  ;;  %4971 = vmatprep.mubr.msk.f32.mxu0 %vm480_vm0, %v4755_v41  ;;  %v826_v52 = vsel %vm824_vm3, %v821_v49, %v823_v36  ;;  %v825_v53 = vsel %vm824_vm3, %v819_v46, %v821_v49  ;;  %v5906_v36 = vsub.s32 2, %v5903_v35 }
  0x94   : > { %v1008_v50 = vpop.permute.xlu1 %1007  ;;  %4990 = vmatpush3.msk.msra.mxu1 %vm487_vm1, %v5726_v42  ;;  %4991 = vmatprep.mubr.msk.f32.mxu1 %vm480_vm0, %v5752_v48 }
  0x95   : > { %v1013_v58 = vsel %vm1011_vm4, %v1008_v50, %v1010_v44 }
  0x96   : > { %4972 = vmatmul.mubr.msk.f32.vlgmr.msra.gmra.mrb[4].mxu0 %vm480_vm0, %v4756_v45  ;;  %v1384_v51 = vpop.permute.xlu0 %1383 }
  0x97   : > { %4765 = vmatpush1.msk.msra.mxu0 %vm487_vm1, %v5636_v2  ;;  %722 = vmatprep.mubr.f32.mxu0 %v5508_v1 }
  0x98   : > { %4773 = vmatprep.subr.msk.mxu0 %vm487_vm1, %v826_v52  ;;  %v5771_v54 = vpop.permute.xlu1 %1571  ;;  %4994 = vmatprep.subr.msk.mxu1 %vm487_vm1, %v1384_v51 }
  0x9a   : > { %4766 = vmatmul.mubr.msk.f32.vlgmr.msra.gmra.mrb[0].mxu0 %vm480_vm0, %v5622_v0  ;;  %v1006_v56 = vpop.permute.xlu0 %1005  ;;  %v5804_v0 = vld [vmem:[%s6550_s2 + $0x58] sm:$0xff] }
  0x9b   : > { %4774 = vmatpush1.msk.msra.mxu0 %vm487_vm1, %v825_v53  ;;  %4992 = vmatmul.mubr.msk.f32.vlgmr.msra.gmra.mrb[0].mxu1 %vm480_vm0, %v5776_v55  ;;  %v1012_v63 = vsel %vm1011_vm4, %v1006_v56, %v1008_v50  ;;  %v5926_v56 = vsub.s32 0, %v5903_v35 }
  0x9c   : > { %4782 = vmatprep.subr.msk.mxu0 %vm487_vm1, %v1013_v58  ;;  %v1195_v59 = vpop.permute.xlu1 %1194  ;;  %728 = vmatprep.mubr.f32.mxu0 %v5508_v1 }
  0x9d   : > { %4995 = vmatpush3.msk.msra.mxu1 %vm487_vm1, %v1384_v51  ;;  %4996 = vmatprep.mubr.msk.f32.mxu1 %vm480_vm0, %v5784_v57 }
  0x9e   : > { %4767 = vmatmul.mubr.msk.f32.gmra.mrb[2].mxu0 %vm480_vm0, %v5642_v4  ;;  %v1574_v60 = vpop.permute.xlu0 %1573  ;;  %v1200_v4 = vsel %vm1198_vm6, %v1195_v59, %v5726_v42 }
  0x9f   : > { %903 = vmatprep.mubr.f32.mxu0 %v5508_v1  ;;  %v1578_v61 = vsel %vm1575_vm5, %v5771_v54, %v1574_v60 }
  0xa0   : > { %v1763_v62 = vpop.permute.xlu1 %1762  ;;  %4999 = vmatprep.subr.msk.mxu1 %vm487_vm1, %v1578_v61 }
  0xa2   : > { %4775 = vmatmul.mubr.msk.f32.vlgmr.msra.gmra.mrb[0].mxu0 %vm480_vm0, %v5654_v6  ;;  %v1193_v2 = vpop.permute.xlu0 %1192 }
  0xa3   : > { %4783 = vmatpush1.msk.msra.mxu0 %vm487_vm1, %v1012_v63  ;;  %4997 = vmatmul.mubr.msk.f32.vlgmr.msra.gmra.mrb[0].mxu1 %vm480_vm0, %v5804_v0  ;;  %v1199_v8 = vsel %vm1198_vm6, %v1193_v2, %v1195_v59 }
  0xa4   : > { %4791 = vmatprep.subr.msk.mxu0 %vm487_vm1, %v1200_v4  ;;  %v1382_v5 = vpop.permute.xlu1 %1381  ;;  %909 = vmatprep.mubr.f32.mxu0 %v5508_v1 }
  0xa5   : > { %5000 = vmatpush3.msk.msra.mxu1 %vm487_vm1, %v1578_v61  ;;  %5001 = vmatprep.mubr.msk.f32.mxu1 %vm480_vm0, %v5812_v3  ;;  %v1387_v13 = vsel %vm1385_vm8, %v1382_v5, %v1384_v51  ;;  %v5919_v51 = vld [vmem:[%s6552_s4 + $0x10] sm:$0xff] }
  0xa6   : > { %4776 = vmatmul.mubr.msk.f32.gmra.mrb[2].mxu0 %vm480_vm0, %v5711_v37  ;;  %v1765_v6 = vpop.permute.xlu0 %1764 }
  0xa7   : > { %1090 = vmatprep.mubr.f32.mxu0 %v5508_v1  ;;  %v1769_v7 = vsel %vm1766_vm7, %v1763_v62, %v1765_v6 }
  0xa8   : > { %5004 = vmatprep.subr.msk.mxu1 %vm487_vm1, %v1769_v7  ;;  %v1954_v10 = vpop.permute.xlu1 %1953 }
  0xaa   : > { %4784 = vmatmul.mubr.msk.f32.vlgmr.msra.gmra.mrb[0].mxu0 %vm480_vm0, %v5717_v38  ;;  %v1380_v11 = vpop.permute.xlu0 %1379  ;;  %v2155_v38 = vld [vmem:[%s6549_s1] sm:$0x7] }
  0xab   : > { %4792 = vmatpush1.msk.msra.mxu0 %vm487_vm1, %v1199_v8  ;;  %5002 = vmatmul.mubr.msk.f32.vlgmr.msra.gmra.mrb[0].mxu1 %vm480_vm0, %v4808_v9  ;;  %v1386_v17 = vsel %vm1385_vm8, %v1380_v11, %v1382_v5  ;;  %v2168_v44 = vrot.slane %v2155_v38, %v5906_v36  ;;  %v2160_v60 = vrot.slane %v2155_v38, %v5926_v56 }
  0xac   : > { %4800 = vmatprep.subr.msk.mxu0 %vm487_vm1, %v1387_v13  ;;  %1096 = vmatprep.mubr.f32.mxu0 %v5508_v1  ;;  %v1570_v16 = vpop.permute.xlu1 %1569 }
  0xad   : > { %5005 = vmatpush3.msk.msra.mxu1 %vm487_vm1, %v1769_v7  ;;  %5006 = vmatprep.mubr.msk.f32.mxu1 %vm480_vm0, %v4816_v12  ;;  %v1577_v20 = vsel %vm1575_vm5, %v1570_v16, %v5771_v54 }
  0xae   : > { %4785 = vmatmul.mubr.msk.f32.gmra.mrb[2].mxu0 %vm480_vm0, %v5744_v47  ;;  %v1956_v14 = vpop.permute.xlu0 %1955 }
  0xaf   : > { %1277 = vmatprep.mubr.f32.mxu0 %v5508_v1  ;;  %v1960_v15 = vsel %vm1957_vm9, %v1954_v10, %v1956_v14 }
  0xb0   : > { %5009 = vmatprep.subr.msk.mxu1 %vm487_vm1, %v1960_v15  ;;  %v1761_v22 = vpop.permute.xlu1 %1760 }
  0xb1   : > { %v1768_v25 = vsel %vm1766_vm7, %v1761_v22, %v1763_v62 }
  0xb2   : > { %4793 = vmatmul.mubr.msk.f32.vlgmr.msra.gmra.mrb[0].mxu0 %vm480_vm0, %v5752_v48  ;;  %v1568_v21 = vpop.permute.xlu0 %1567 }
  0xb3   : > { %4801 = vmatpush1.msk.msra.mxu0 %vm487_vm1, %v1386_v17  ;;  %5007 = vmatmul.mubr.msk.f32.vlgmr.msra.gmra.mrb[0].mxu1 %vm480_vm0, %v4817_v18  ;;  %v1576_v23 = vsel %vm1575_vm5, %v1568_v21, %v1570_v16  ;;  %v3893_v21 = vld [vmem:[%s6555_s7] sm:$0xff] }
  0xb4   : > { %4809 = vmatprep.subr.msk.mxu0 %vm487_vm1, %v1577_v20  ;;  %1283 = vmatprep.mubr.f32.mxu0 %v5508_v1  ;;  %v1952_v27 = vpop.permute.xlu1 %1951  ;;  %v3868_v20 = vld [vmem:[%s6553_s5 + $0x8] sm:$0xff] }
  0xb5   : > { %5010 = vmatpush3.msk.msra.mxu1 %vm487_vm1, %v1960_v15  ;;  %5011 = vmatprep.mubr.msk.f32.mxu1 %vm480_vm0, %v4825_v19  ;;  %v1959_v29 = vsel %vm1957_vm9, %v1952_v27, %v1954_v10 }
  0xb6   : > { %4794 = vmatmul.mubr.msk.f32.gmra.mrb[2].mxu0 %vm480_vm0, %v5776_v55  ;;  %v1759_v26 = vpop.permute.xlu0 %1758 }
  0xb7   : > { %1464 = vmatprep.mubr.f32.mxu0 %v5508_v1  ;;  %v1767_v28 = vsel %vm1766_vm7, %v1759_v26, %v1761_v22  ;;  %v3894_v22 = vld [vmem:[%s6555_s7 + $0x8] sm:$0x1] }
  0xba   : > { %4802 = vmatmul.mubr.msk.f32.vlgmr.msra.gmra.mrb[0].mxu0 %vm480_vm0, %v5784_v57  ;;  %v1950_v30 = vpop.permute.xlu0 %1949  ;;  %v5929_v57 = vsub.s32 1, %v5903_v35 }
  0xbb   : > { %4810 = vmatpush1.msk.msra.mxu0 %vm487_vm1, %v1576_v23  ;;  %5012 = vmatmul.mubr.msk.f32.vlgmr.msra.gmra.mrb[0].mxu1 %vm480_vm0, %v4826_v24  ;;  %v1958_v31 = vsel %vm1957_vm9, %v1950_v30, %v1952_v27  ;;  %v6002_v30 = vld [vmem:[%s6552_s4 + $0x18] sm:$0xff] }
  0xbc   : > { %4818 = vmatprep.subr.msk.mxu0 %vm487_vm1, %v1768_v25  ;;  %1470 = vmatprep.mubr.f32.mxu0 %v5508_v1  ;;  %v2164_v63 = vrot.slane %v2155_v38, %v5929_v57 }
  0xbd   : > { %5018 = vmatprep.mubr.msk.f32.mxu1 %vm2227_vm12, %v5919_v51 }
  0xbe   : > { %4803 = vmatmul.mubr.msk.f32.gmra.mrb[2].mxu0 %vm480_vm0, %v5804_v0 }
  0xbf   : > { %1655 = vmatprep.mubr.f32.mxu0 %v5508_v1 }
  0xc2   : > { %4811 = vmatmul.mubr.msk.f32.vlgmr.msra.gmra.mrb[0].mxu0 %vm480_vm0, %v5812_v3 }
  0xc3   : > { %4819 = vmatpush1.msk.msra.mxu0 %vm487_vm1, %v1767_v28  ;;  %1661 = vmatprep.mubr.f32.mxu0 %v5508_v1 }
  0xc4   : > { %4827 = vmatprep.subr.msk.mxu0 %vm487_vm1, %v1959_v29 }
  0xc5   : > { %v2136_v42 = vpop.permute.xlu1 %2135 }
  0xc6   : > { %4812 = vmatmul.mubr.msk.f32.gmra.mrb[2].mxu0 %vm480_vm0, %v4808_v9 }
  0xc7   : > { %1846 = vmatprep.mubr.f32.mxu0 %v5508_v1 }
  0xca   : > { %4820 = vmatmul.mubr.msk.f32.vlgmr.msra.gmra.mrb[0].mxu0 %vm480_vm0, %v4816_v12 }
  0xcb   : > { %1852 = vmatprep.mubr.f32.mxu0 %v5508_v1  ;;  %4828 = vmatpush1.msk.msra.mxu0 %vm487_vm1, %v1958_v31  ;;  %v2141_v39 = vpop.permute.xlu0 %2140  ;;  %vm4124_vm1 = vcmask 1044484  }
  0xce   : > { %4821 = vmatmul.mubr.msk.f32.gmra.mrb[2].mxu0 %vm480_vm0, %v4817_v18 }
  0xcf   : > { %2037 = vmatprep.mubr.f32.mxu0 %v5508_v1 }
  0xd2   : > { %4829 = vmatmul.mubr.msk.f32.vlgmr.msra.gmra.mrb[0].mxu0 %vm480_vm0, %v4825_v19  ;;  %v3867_v19 = vld [vmem:[%s6553_s5] sm:$0xff] }
  0xd3   : > { %2043 = vmatprep.mubr.f32.mxu0 %v5508_v1 }
  0xd6   : > { %4830 = vmatmul.mubr.msk.f32.gmra.mrb[2].mxu0 %vm480_vm0, %v4826_v24  ;;  %vm4101_vm0 = vcmask 1044480  }
  0xd7   : > { %2298 = vmatprep.mubr.f32.mxu0 %v5508_v1 }
 0x169   : > { %v4973_v32 = vpop.f32.mrb[4].mxu0 }
 0x16a   : > { %v637_v33 = vpop.f32.mrb[5].mxu0 }
 0x18e   : > { %v5013_v37 = vpop.f32.mrb[0].mxu1 }
 0x18f   : > { %v5164_v40 = vadd.f32 %v5013_v37, %v4973_v32  ;;  %v2116_v41 = vpop.f32.mrb[1].mxu1  ;;  %v6012_v32 = vld [vmem:[%s6552_s4] sm:$0xff] }
 0x190   : > { %v5165_v43 = vadd.f32 %v2116_v41, %v637_v33 }
 0x191   : > { %v2148_v45 = vadd.f32 %v5164_v40, %v2141_v39 }
 0x192   : > { %v2145_v46 = vadd.f32 %v5165_v43, %v2136_v42 }
 0x193   : > { %v2154_v47 = vmax.f32 %v2148_v45, 0.0 }
 0x194   : > { %v2151_v48 = vmax.f32 %v2145_v46, 0.0 }
 0x195   : > { %v2177_v49 = vmul.f32 %v2168_v44, %v2154_v47 }
 0x196   : > { %v2174_v50 = vmul.f32 %v2168_v44, %v2151_v48 }
 0x197   : > { %2184 = vst.msk [vmem:[#allocation2 + $0x28] sm:$0xff] %vm2180_vm10, %v2177_v49 }
 0x198   : > { %2187 = vst.msk [vmem:[#allocation2 + $0x28] sm:$0xff] %vm2185_vm11, %v5508_v1 }
 0x199   : > { %2181 = vst.msk [vmem:[#allocation2 + $0x10] sm:$0xff] %vm2180_vm10, %v2174_v50 }
 0x19a   : > { %2186 = vst.msk [vmem:[#allocation2 + $0x10] sm:$0xff] %vm2185_vm11, %v5508_v1  ;;  %vm4470_vm11 = vcmask 375808  }
 0x19f   : > { %v2195_v52 = vld [vmem:[#allocation2 + $0x28] sm:$0xff] }
 0x1a1   : > { %v2192_v53 = vld [vmem:[#allocation2 + $0x10] sm:$0xff] }
 0x1a2   : > { %v5324_v54 = vpack.i.bf16 %v2195_v52, %v2192_v53  ;;  %v5923_v55 = vpack.c.bf16 %v2195_v52, %v2192_v53 }
 0x1a4   : > { %5325 = vrot.lane.b32.xlu1 %v5324_v54, %s5509_s25 }
 0x1a5   : > { %v2039_v58 = vpop.f32.mrb[0].mxu0 }
 0x1a6   : > { %v2143_v59 = vadd.f32 %v2136_v42, %v2039_v58  ;;  %v2041_v61 = vpop.f32.mrb[1].mxu0 }
 0x1a7   : > { %v2144_v62 = vadd.f32 %v2136_v42, %v2041_v61 }
 0x1a8   : > { %5330 = vrot.lane.b32.xlu1 %v5324_v54, %s5510_s28  ;;  %v2149_v0 = vmax.f32 %v2143_v59, 0.0 }
 0x1a9   : > { %v2150_v2 = vmax.f32 %v2144_v62, 0.0  ;;  %v2045_v3 = vpop.f32.mrb[2].mxu0 }
 0x1aa   : > { %v5935_v4 = vmul.f32 %v2160_v60, %v2149_v0  ;;  %v2146_v5 = vadd.f32 %v2141_v39, %v2045_v3  ;;  %v2047_v6 = vpop.f32.mrb[3].mxu0 }
 0x1ab   : > { %v5937_v7 = vmul.f32 %v2164_v63, %v2150_v2  ;;  %v2147_v8 = vadd.f32 %v2141_v39, %v2047_v6  ;;  %v6027_v39 = vld [vmem:[%s6552_s4 + $0x20] sm:$0xff]  ;;  %v4850_v2 = vld [vmem:[%s6552_s4 + $0x30] sm:$0xff] }
 0x1ac   : > { %v2152_v9 = vmax.f32 %v2146_v5, 0.0 }
 0x1ad   : > { %v2153_v10 = vmax.f32 %v2147_v8, 0.0  ;;  %v5334_v11 = vpack.i.bf16 %v2192_v53, %v5937_v7 }
 0x1ae   : > { %v5940_v12 = vmul.f32 %v2160_v60, %v2152_v9  ;;  %v6040_v60 = vld [vmem:[%s6552_s4 + $0x28] sm:$0xff] }
 0x1af   : > { %v5942_v13 = vmul.f32 %v2164_v63, %v2153_v10  ;;  %5335 = vrot.lane.b32.xlu0 %v5334_v11, %s5512_s30 }
 0x1b0   : > { %v5344_v14 = vpack.i.bf16 %v5940_v12, %v5935_v4  ;;  %v5094_v15 = vpack.c.bf16 %v5940_v12, %v5935_v4 }
 0x1b1   : > { %v5339_v16 = vpack.i.bf16 %v2195_v52, %v5942_v13  ;;  %v5399_v17 = vpack.i.bf16 %v5942_v13, %v5937_v7  ;;  %v5092_v18 = vpack.c.bf16 %v5942_v13, %v5937_v7  ;;  %v4862_v7 = vld [vmem:[%s6552_s4 + $0x50] sm:$0xff] }
 0x1b3   : > { %5340 = vrot.lane.b32.xlu1 %v5339_v16, %s5512_s30  ;;  %5345 = vrot.lane.b32.xlu0 %v5344_v14, %s5512_s30 }
 0x1b7   : > { %5350 = vrot.lane.b32.xlu1 %v5334_v11, %s5511_s29  ;;  %5355 = vrot.lane.b32.xlu0 %v5339_v16, %s5511_s29 }
 0x1bb   : > { %5360 = vrot.lane.b32.xlu1 %v5344_v14, %s5511_s29  ;;  %5365 = vrot.lane.b32.xlu0 %v5334_v11, %s5513_s11  ;;  %s6242_s29 = scalar_lea.vmem %s6557_s9, %s6224_s20 }
 0x1bf   : > { %5370 = vrot.lane.b32.xlu1 %v5339_v16, %s5513_s11  ;;  %5375 = vrot.lane.b32.xlu0 %v5344_v14, %s5513_s11  ;;  %s5518_s11 = smov 42  }
 0x1c3   : > { %5380 = vrot.lane.b32.xlu1 %v5334_v11, %s6563_s12  ;;  %5385 = vrot.lane.b32.xlu0 %v5339_v16, %s6563_s12 }
 0x1c7   : > { %5390 = vrot.lane.b32.xlu1 %v5344_v14, %s6563_s12  ;;  %5400 = vrot.lane.b32.xlu0 %v5399_v17, %s5509_s25 }
 0x1cb   : > { %5395 = vrot.lane.b32.xlu1 %v5344_v14, %s5509_s25  ;;  %5405 = vrot.lane.b32.xlu0 %v5334_v11, %s5515_s17  ;;  %s5519_s25 = smov 124  }
 0x1cf   : > { %5410 = vrot.lane.b32.xlu1 %v5339_v16, %s5515_s17  ;;  %5415 = vrot.lane.b32.xlu0 %v5344_v14, %s5515_s17  ;;  %s5521_s17 = smov 120  }
 0x1d3   : > { %5430 = vrot.lane.b32.xlu1 %v5399_v17, %s5510_s28  ;;  %5420 = vrot.lane.b32.xlu0 %v5334_v11, %s5516_s18 }
 0x1d7   : > { %5435 = vrot.lane.b32.xlu1 %v5339_v16, %s5516_s18  ;;  %5425 = vrot.lane.b32.xlu0 %v5344_v14, %s5510_s28  ;;  %s5526_s28 = smov 70  }
 0x1db   : > { %5440 = vrot.lane.b32.xlu1 %v5344_v14, %s5516_s18  ;;  %3871 = vperm.xlu0 %5323, %v3867_v19   ;;  %v4851_v14 = vld [vmem:[%s6552_s4 + $0x38] sm:$0xff] }
 0x1df   : > { %3876 = vperm.xlu1 %5322, %v3868_v20   ;;  %3897 = vperm.xlu0 %5323, %v3893_v21  }
 0x1e3   : > { %3902 = vperm.xlu1 %5322, %v3894_v22  }
 0x216   : > { %v5987_v23 = vpop.permute.xlu1 %5325 }
 0x217   : > { %v5328_v24 = vunpack.i.h.bf16 %v5987_v23  ;;  %v5327_v25 = vunpack.i.l.bf16 %v5987_v23  ;;  %v4857_v23 = vld [vmem:[%s6552_s4 + $0x48] sm:$0xff] }
 0x219   : > { %v5088_v26 = vpack.c.bf16 %v5328_v24, %v5327_v25 }
 0x21a   : > { %v5995_v27 = vpop.permute.xlu1 %5330 }
 0x21b   : > { %5089 = vmatprep.subr.bf16.mxu1 %v5088_v26  ;;  %v5333_v28 = vunpack.i.h.bf16 %v5995_v27  ;;  %v5332_v29 = vunpack.i.l.bf16 %v5995_v27 }
 0x21c   : > { %5091 = vmatpush3.bf16.msra.mxu1 %v5088_v26 }
 0x21d   : > { %5097 = vmatprep.subr.bf16.mxu1 %v5923_v55  ;;  %v5104_v31 = vpack.c.bf16 %v5333_v28, %v5332_v29 }
 0x21f   : > { %5019 = vmatmul.mubr.msk.f32.vlgmr.msra.gmra.mrb[2].mxu1 %vm2227_vm12, %v6002_v30 }
 0x220   : > { %5099 = vmatpush3.bf16.msra.mxu1 %v5923_v55  ;;  %5025 = vmatprep.mubr.msk.f32.mxu1 %vm2227_vm12, %v6012_v32 }
 0x221   : > { %5105 = vmatprep.subr.bf16.mxu1 %v5104_v31  ;;  %v5336_v33 = vpop.permute.xlu0 %5335 }
 0x222   : > { %v5338_v37 = vunpack.i.h.bf16 %v5336_v33  ;;  %v5337_v38 = vunpack.i.l.bf16 %v5336_v33 }
 0x224   : > { %v2749_v46 = vsel %vm1011_vm4, %v5337_v38, %v5338_v37 }
 0x225   : > { %v5341_v40 = vpop.permute.xlu1 %5340  ;;  %v5346_v41 = vpop.permute.xlu0 %5345 }
 0x226   : > { %v5343_v42 = vunpack.i.h.bf16 %v5341_v40  ;;  %v5342_v43 = vunpack.i.l.bf16 %v5341_v40  ;;  %v5348_v44 = vunpack.i.h.bf16 %v5346_v41  ;;  %v5347_v45 = vunpack.i.l.bf16 %v5346_v41 }
 0x227   : > { %5026 = vmatmul.mubr.msk.f32.vlgmr.msra.gmra.mrb[2].mxu1 %vm2227_vm12, %v6022_v34 }
 0x228   : > { %5107 = vmatpush3.bf16.msra.mxu1 %v5104_v31  ;;  %5032 = vmatprep.mubr.msk.f32.mxu1 %vm2227_vm12, %v6027_v39  ;;  %v2751_v47 = vsel %vm1011_vm4, %v5342_v43, %v5343_v42  ;;  %v2750_v52 = vsel %vm1011_vm4, %v5348_v44, %v5342_v43  ;;  %v2748_v53 = vsel %vm1011_vm4, %v5347_v45, %v5337_v38  ;;  %v4856_v43 = vld [vmem:[%s6552_s4 + $0x40] sm:$0xff]  ;;  %vm4331_vm4 = vcmask 256128  }
 0x229   : > { %v5351_v48 = vpop.permute.xlu1 %5350  ;;  %v5356_v49 = vpop.permute.xlu0 %5355  ;;  %v5108_v50 = vpack.c.bf16 %v2751_v47, %v2749_v46  ;;  %v5110_v61 = vpack.c.bf16 %v2750_v52, %v2748_v53  ;;  %v5112_v0 = vpack.c.bf16 %v5343_v42, %v5338_v37 }
 0x22a   : > { %v5353_v54 = vunpack.i.h.bf16 %v5351_v48  ;;  %v5352_v55 = vunpack.i.l.bf16 %v5351_v48  ;;  %v5358_v58 = vunpack.i.h.bf16 %v5356_v49  ;;  %v5357_v59 = vunpack.i.l.bf16 %v5356_v49 }
 0x22b   : > { %5109 = vmatprep.subr.bf16.mxu1 %v5108_v50 }
 0x22c   : > { %v2938_v3 = vsel %vm1198_vm6, %v5352_v55, %v5353_v54  ;;  %v2940_v5 = vsel %vm1198_vm6, %v5357_v59, %v5358_v58  ;;  %v5120_v40 = vpack.c.bf16 %v5358_v58, %v5353_v54 }
 0x22d   : > { %v5361_v62 = vpop.permute.xlu1 %5360  ;;  %v6042_v63 = vpop.permute.xlu0 %5365  ;;  %v5116_v11 = vpack.c.bf16 %v2940_v5, %v2938_v3 }
 0x22e   : > { %v5363_v9 = vunpack.i.h.bf16 %v5361_v62  ;;  %v5362_v10 = vunpack.i.l.bf16 %v5361_v62  ;;  %v5368_v31 = vunpack.i.h.bf16 %v6042_v63  ;;  %v5367_v33 = vunpack.i.l.bf16 %v6042_v63 }
 0x22f   : > { %5033 = vmatmul.mubr.msk.f32.vlgmr.msra.gmra.mrb[2].mxu1 %vm2227_vm12, %v6040_v60 }
 0x230   : > { %5111 = vmatpush1.bf16.msra.mxu1 %v5110_v61  ;;  %2828 = vmatprep.mubr.f32.mxu1 %v5508_v1  ;;  %v2937_v19 = vsel %vm1198_vm6, %v5362_v10, %v5352_v55  ;;  %v2939_v20 = vsel %vm1198_vm6, %v5363_v9, %v5357_v59  ;;  %v3127_v49 = vsel %vm1385_vm8, %v5367_v33, %v5368_v31  ;;  %vm4358_vm6 = vcmask 518528  }
 0x231   : > { %5113 = vmatprep.subr.bf16.mxu1 %v5112_v0  ;;  %v6052_v6 = vpop.permute.xlu1 %5370  ;;  %v5376_v8 = vpop.permute.xlu0 %5375  ;;  %v5118_v26 = vpack.c.bf16 %v2939_v20, %v2937_v19 }
 0x232   : > { %v5373_v21 = vunpack.i.h.bf16 %v6052_v6  ;;  %v5372_v22 = vunpack.i.l.bf16 %v6052_v6  ;;  %v5378_v47 = vunpack.i.h.bf16 %v5376_v8  ;;  %v5377_v48 = vunpack.i.l.bf16 %v5376_v8 }
 0x233   : > { %4852 = vmatmul.mubr.msk.f32.vlgmr.msra.gmra.mrb[4].mxu1 %vm2227_vm12, %v4850_v2 }
 0x234   : > { %5115 = vmatpush3.bf16.msra.mxu1 %v5112_v0  ;;  %2834 = vmatprep.mubr.f32.mxu1 %v5508_v1  ;;  %v3129_v44 = vsel %vm1385_vm8, %v5372_v22, %v5373_v21  ;;  %v3128_v59 = vsel %vm1385_vm8, %v5378_v47, %v5372_v22  ;;  %v3126_v61 = vsel %vm1385_vm8, %v5377_v48, %v5367_v33  ;;  %v4869_v47 = vld [vmem:[%s6552_s4 + $0x68] sm:$0xff]  ;;  %vm4382_vm8 = vcmask 572416  }
 0x235   : > { %5117 = vmatprep.subr.bf16.mxu1 %v5116_v11  ;;  %v6059_v16 = vpop.permute.xlu1 %5380  ;;  %v6061_v17 = vpop.permute.xlu0 %5385  ;;  %v5124_v54 = vpack.c.bf16 %v3129_v44, %v3127_v49  ;;  %v5128_v8 = vpack.c.bf16 %v5373_v21, %v5368_v31  ;;  %v5126_v9 = vpack.c.bf16 %v3128_v59, %v3126_v61 }
 0x236   : > { %v5382_v3 = vunpack.i.l.bf16 %v6059_v16  ;;  %v5388_v5 = vunpack.i.h.bf16 %v6061_v17  ;;  %v5387_v6 = vunpack.i.l.bf16 %v6061_v17 }
 0x237   : > { %4853 = vmatmul.mubr.msk.f32.gmra.mrb[6].mxu1 %vm2227_vm12, %v4851_v14 }
 0x238   : > { %5039 = vmatprep.mubr.msk.f32.mxu1 %vm2227_vm12, %v4850_v2  ;;  %v5383_v2 = vunpack.i.h.bf16 %v6059_v16  ;;  %v3318_v19 = vsel %vm1575_vm5, %v5387_v6, %v5388_v5 }
 0x239   : > { %v6071_v37 = vpop.permute.xlu1 %5390  ;;  %v5401_v38 = vpop.permute.xlu0 %5400 }
 0x23a   : > { %v5403_v41 = vunpack.i.h.bf16 %v5401_v38  ;;  %v5402_v42 = vunpack.i.l.bf16 %v5401_v38  ;;  %v3316_v17 = vsel %vm1575_vm5, %v5382_v3, %v5383_v2  ;;  %v5393_v22 = vunpack.i.h.bf16 %v6071_v37 }
 0x23b   : > { %5040 = vmatmul.mubr.msk.f32.vlgmr.msra.gmra.mrb[2].mxu1 %vm2227_vm12, %v4851_v14 }
 0x23c   : > { %5119 = vmatpush1.bf16.msra.mxu1 %v5118_v26  ;;  %3017 = vmatprep.mubr.f32.mxu1 %v5508_v1  ;;  %v2218_v45 = vsel %vm477_vm2, %v5402_v42, %v5327_v25  ;;  %v2220_v46 = vsel %vm477_vm2, %v5403_v41, %v5328_v24  ;;  %v5392_v26 = vunpack.i.l.bf16 %v6071_v37 }
 0x23d   : > { %5121 = vmatprep.subr.bf16.mxu1 %v5120_v40  ;;  %v5396_v50 = vpop.permute.xlu1 %5395  ;;  %v6086_v52 = vpop.permute.xlu0 %5405  ;;  %v5084_v53 = vpack.c.bf16 %v2220_v46, %v2218_v45 }
 0x23e   : > { %v5398_v55 = vunpack.i.h.bf16 %v5396_v50  ;;  %v5397_v58 = vunpack.i.l.bf16 %v5396_v50  ;;  %v3315_v31 = vsel %vm1575_vm5, %v5392_v26, %v5382_v3 }
 0x23f   : > { %4858 = vmatmul.mubr.msk.f32.vlgmr.msra.gmra.mrb[4].mxu1 %vm2227_vm12, %v4856_v43  ;;  %5085 = vmatprep.subr.bf16.mxu0 %v5084_v53 }
 0x240   : > { %5123 = vmatpush3.bf16.msra.mxu1 %v5120_v40  ;;  %3023 = vmatprep.mubr.f32.mxu1 %v5508_v1  ;;  %v2217_v24 = vsel %vm477_vm2, %v5397_v58, %v5402_v42  ;;  %v2219_v25 = vsel %vm477_vm2, %v5398_v55, %v5403_v41  ;;  %v5408_v40 = vunpack.i.h.bf16 %v6086_v52  ;;  %v5407_v41 = vunpack.i.l.bf16 %v6086_v52  ;;  %vm6263_vm2 = vmor %vm4123_vm13, %vm4124_vm1 }
 0x241   : > { %5125 = vmatprep.subr.bf16.mxu1 %v5124_v54  ;;  %v5086_v62 = vpack.c.bf16 %v2219_v25, %v2217_v24  ;;  %v6097_v63 = vpop.permute.xlu1 %5410  ;;  %v6099_v0 = vpop.permute.xlu0 %5415  ;;  %v5136_v42 = vpack.c.bf16 %v5388_v5, %v5383_v2 }
 0x242   : > { %v5413_v33 = vunpack.i.h.bf16 %v6097_v63  ;;  %v5412_v37 = vunpack.i.l.bf16 %v6097_v63  ;;  %v3505_v44 = vsel %vm1766_vm7, %v5407_v41, %v5408_v40  ;;  %v5418_v45 = vunpack.i.h.bf16 %v6099_v0  ;;  %v4875_v63 = vld [vmem:[%s6552_s4 + $0x78] sm:$0xff] }
 0x243   : > { %4859 = vmatmul.mubr.msk.f32.gmra.mrb[6].mxu1 %vm2227_vm12, %v4857_v23  ;;  %5087 = vmatpush1.bf16.msra.mxu0 %v5086_v62  ;;  %v5417_v46 = vunpack.i.l.bf16 %v6099_v0 }
 0x244   : > { %5046 = vmatprep.mubr.msk.f32.mxu1 %vm2227_vm12, %v4856_v43  ;;  %5093 = vmatprep.subr.bf16.mxu0 %v5092_v18  ;;  %v5132_v18 = vpack.c.bf16 %v3318_v19, %v3316_v17  ;;  %v3507_v43 = vsel %vm1766_vm7, %v5412_v37, %v5413_v33  ;;  %v3506_v49 = vsel %vm1766_vm7, %v5418_v45, %v5412_v37  ;;  %v3892_v45 = vld [vmem:[%s6554_s6 + $0x8] sm:$0x1] }
 0x245   : > { %v5431_v10 = vpop.permute.xlu1 %5430  ;;  %v6110_v11 = vpop.permute.xlu0 %5420  ;;  %v3504_v50 = vsel %vm1766_vm7, %v5417_v46, %v5407_v41  ;;  %v5144_v58 = vpack.c.bf16 %v5413_v33, %v5408_v40  ;;  %vm4371_vm7 = vcmask 649728  }
 0x246   : > { %v5433_v14 = vunpack.i.h.bf16 %v5431_v10  ;;  %v5432_v16 = vunpack.i.l.bf16 %v5431_v10  ;;  %4836 = vmatmul.mubr.msk.f32.vlgmr.msra.gmra.mrb[6].mxu0 %vm2227_vm12, %v5919_v51  ;;  %v5142_v53 = vpack.c.bf16 %v3506_v49, %v3504_v50  ;;  %v5423_v54 = vunpack.i.h.bf16 %v6110_v11 }
 0x247   : > { %5047 = vmatmul.mubr.msk.f32.vlgmr.msra.gmra.mrb[2].mxu1 %vm2227_vm12, %v4857_v23  ;;  %5095 = vmatpush1.bf16.msra.mxu0 %v5094_v15  ;;  %v4863_v15 = vld [vmem:[%s6552_s4 + $0x58] sm:$0xff]  ;;  %v5422_v55 = vunpack.i.l.bf16 %v6110_v11 }
 0x248   : > { %5127 = vmatpush1.bf16.msra.mxu1 %v5126_v9  ;;  %3206 = vmatprep.mubr.f32.mxu1 %v5508_v1  ;;  %v2560_v51 = vsel %vm824_vm3, %v5432_v16, %v5332_v29  ;;  %v2562_v13 = vsel %vm824_vm3, %v5433_v14, %v5333_v28 }
 0x249   : > { %5129 = vmatprep.subr.bf16.mxu1 %v5128_v8  ;;  %v5426_v20 = vpop.permute.xlu0 %5425  ;;  %2304 = vmatprep.mubr.f32.mxu0 %v5508_v1  ;;  %v5100_v21 = vpack.c.bf16 %v2562_v13, %v2560_v51  ;;  %v5436_v48 = vpop.permute.xlu1 %5435  ;;  %v3694_v25 = vsel %vm1957_vm9, %v5422_v55, %v5423_v54 }
 0x24a   : > { %v5428_v4 = vunpack.i.h.bf16 %v5426_v20  ;;  %v5427_v12 = vunpack.i.l.bf16 %v5426_v20  ;;  %4837 = vmatmul.mubr.msk.f32.gmra.mrb[8].mxu0 %vm2227_vm12, %v6002_v30  ;;  %v3317_v30 = vsel %vm1575_vm5, %v5393_v22, %v5387_v6  ;;  %v5437_v52 = vunpack.i.l.bf16 %v5436_v48  ;;  %v4880_v6 = vld [vmem:[%s6552_s4 + $0x80] sm:$0xff] }
 0x24b   : > { %4864 = vmatmul.mubr.msk.f32.vlgmr.msra.gmra.mrb[4].mxu1 %vm2227_vm12, %v4862_v7  ;;  %5101 = vmatprep.subr.bf16.mxu0 %v5100_v21  ;;  %v5134_v38 = vpack.c.bf16 %v3317_v30, %v3315_v31  ;;  %vm4345_vm5 = vcmask 387328  }
 0x24c   : > { %5131 = vmatpush3.bf16.msra.mxu1 %v5128_v8  ;;  %3212 = vmatprep.mubr.f32.mxu1 %v5508_v1  ;;  %v2561_v27 = vsel %vm824_vm3, %v5428_v4, %v5433_v14  ;;  %v2559_v28 = vsel %vm824_vm3, %v5427_v12, %v5432_v16  ;;  %v4881_v8 = vld [vmem:[%s6552_s4 + $0x88] sm:$0xff]  ;;  %vm4139_vm3 = vcmask 343040  }
 0x24d   : > { %5133 = vmatprep.subr.bf16.mxu1 %v5132_v18  ;;  %v5102_v29 = vpack.c.bf16 %v2561_v27, %v2559_v28  ;;  %2456 = vmatprep.mubr.f32.mxu0 %v5508_v1  ;;  %v5441_v23 = vpop.permute.xlu1 %5440 }
 0x24e   : > { %4840 = vmatmul.mubr.msk.f32.vlgmr.msra.gmra.mrb[6].mxu0 %vm2227_vm12, %v6012_v32  ;;  %v4868_v32 = vld [vmem:[%s6552_s4 + $0x60] sm:$0xff]  ;;  %v5443_v59 = vunpack.i.h.bf16 %v5441_v23  ;;  %v5442_v61 = vunpack.i.l.bf16 %v5441_v23 }
 0x24f   : > { %4865 = vmatmul.mubr.msk.f32.gmra.mrb[6].mxu1 %vm2227_vm12, %v4863_v15  ;;  %5103 = vmatpush1.bf16.msra.mxu0 %v5102_v29 }
 0x250   : > { %5053 = vmatprep.mubr.msk.f32.mxu1 %vm2227_vm12, %v4862_v7  ;;  %2462 = vmatprep.mubr.f32.mxu0 %v5508_v1  ;;  %v3693_v0 = vsel %vm1957_vm9, %v5442_v61, %v5422_v55  ;;  %v3695_v2 = vsel %vm1957_vm9, %v5443_v59, %v5437_v52 }
 0x251   : > { %v5150_v3 = vpack.c.bf16 %v3695_v2, %v3693_v0 }
 0x252   : > { %4841 = vmatmul.mubr.msk.f32.gmra.mrb[8].mxu0 %vm2227_vm12, %v6022_v34  ;;  %v5140_v34 = vpack.c.bf16 %v3507_v43, %v3505_v44  ;;  %v3891_v44 = vld [vmem:[%s6554_s6] sm:$0xff] }
 0x253   : > { %5054 = vmatmul.mubr.msk.f32.vlgmr.msra.gmra.mrb[2].mxu1 %vm2227_vm12, %v4863_v15  ;;  %2639 = vmatprep.mubr.f32.mxu0 %v5508_v1 }
 0x254   : > { %5135 = vmatpush1.bf16.msra.mxu1 %v5134_v38  ;;  %3395 = vmatprep.mubr.f32.mxu1 %v5508_v1 }
 0x255   : > { %5137 = vmatprep.subr.bf16.mxu1 %v5136_v42 }
 0x256   : > { %4846 = vmatmul.mubr.msk.f32.vlgmr.msra.gmra.mrb[6].mxu0 %vm2227_vm12, %v6027_v39  ;;  %v5438_v39 = vunpack.i.h.bf16 %v5436_v48 }
 0x257   : > { %4870 = vmatmul.mubr.msk.f32.vlgmr.msra.gmra.mrb[4].mxu1 %vm2227_vm12, %v4868_v32  ;;  %2645 = vmatprep.mubr.f32.mxu0 %v5508_v1 }
 0x258   : > { %5139 = vmatpush3.bf16.msra.mxu1 %v5136_v42  ;;  %3401 = vmatprep.mubr.f32.mxu1 %v5508_v1  ;;  %v3696_v24 = vsel %vm1957_vm9, %v5437_v52, %v5438_v39  ;;  %v5152_v5 = vpack.c.bf16 %v5438_v39, %v5423_v54 }
 0x259   : > { %5141 = vmatprep.subr.bf16.mxu1 %v5140_v34  ;;  %v5148_v62 = vpack.c.bf16 %v3696_v24, %v3694_v25 }
 0x25a   : > { %4847 = vmatmul.mubr.msk.f32.gmra.mrb[8].mxu0 %vm2227_vm12, %v6040_v60  ;;  %v4874_v60 = vld [vmem:[%s6552_s4 + $0x70] sm:$0xff]  ;;  %v3872_v51 = vpop.permute.xlu0 %3871 }
 0x25b   : > { %4871 = vmatmul.mubr.msk.f32.gmra.mrb[6].mxu1 %vm2227_vm12, %v4869_v47  ;;  %3975 = vmatprep.mubr.f32.mxu0 %v5508_v1 }
 0x25c   : > { %5060 = vmatprep.mubr.msk.f32.mxu1 %vm2227_vm12, %v4868_v32 }
 0x25e   : > { %v3877_v22 = vpop.permute.xlu1 %3876  ;;  %v3898_v46 = vpop.permute.xlu0 %3897 }
 0x25f   : > { %5061 = vmatmul.mubr.msk.f32.vlgmr.msra.gmra.mrb[2].mxu1 %vm2227_vm12, %v4869_v47 }
 0x260   : > { %5143 = vmatpush1.bf16.msra.mxu1 %v5142_v53  ;;  %3584 = vmatprep.mubr.f32.mxu1 %v5508_v1 }
 0x261   : > { %5145 = vmatprep.subr.bf16.mxu1 %v5144_v58 }
 0x262   : > { %v3903_v39 = vpop.permute.xlu1 %3902 }
 0x263   : > { %4876 = vmatmul.mubr.msk.f32.vlgmr.msra.gmra.mrb[4].mxu1 %vm2227_vm12, %v4874_v60 }
 0x264   : > { %5147 = vmatpush3.bf16.msra.mxu1 %v5144_v58  ;;  %3590 = vmatprep.mubr.f32.mxu1 %v5508_v1 }
 0x265   : > { %5149 = vmatprep.subr.bf16.mxu1 %v5148_v62 }
 0x267   : > { %4877 = vmatmul.mubr.msk.f32.gmra.mrb[6].mxu1 %vm2227_vm12, %v4875_v63 }
 0x268   : > { %5067 = vmatprep.mubr.msk.f32.mxu1 %vm2227_vm12, %v4874_v60 }
 0x26b   : > { %5068 = vmatmul.mubr.msk.f32.vlgmr.msra.gmra.mrb[2].mxu1 %vm2227_vm12, %v4875_v63 }
 0x26c   : > { %5151 = vmatpush1.bf16.msra.mxu1 %v5150_v3  ;;  %3773 = vmatprep.mubr.f32.mxu1 %v5508_v1 }
 0x26d   : > { %5153 = vmatprep.subr.bf16.mxu1 %v5152_v5 }
 0x26f   : > { %4882 = vmatmul.mubr.msk.f32.vlgmr.msra.gmra.mrb[4].mxu1 %vm2227_vm12, %v4880_v6 }
 0x270   : > { %5155 = vmatpush3.bf16.msra.mxu1 %v5152_v5  ;;  %3779 = vmatprep.mubr.f32.mxu1 %v5508_v1 }
 0x273   : > { %4883 = vmatmul.mubr.msk.f32.gmra.mrb[6].mxu1 %vm2227_vm12, %v4881_v8 }
 0x274   : > { %5074 = vmatprep.mubr.msk.f32.mxu1 %vm2227_vm12, %v4880_v6 }
 0x277   : > { %5075 = vmatmul.mubr.msk.f32.vlgmr.msra.gmra.mrb[2].mxu1 %vm2227_vm12, %v4881_v8 }
 0x329   : > { %v2641_v9 = vpop.f32.mrb[6].mxu0 }
 0x32a   : > { %v2643_v10 = vpop.f32.mrb[7].mxu0 }
 0x32d   : > { %v2647_v11 = vpop.f32.mrb[8].mxu0 }
 0x32e   : > { %v2649_v14 = vpop.f32.mrb[9].mxu0 }
 0x342   : > { %v3775_v16 = vpop.f32.mrb[4].mxu1 }
 0x343   : > { %v5166_v17 = vadd.f32 %v3775_v16, %v2641_v9  ;;  %v3777_v19 = vpop.f32.mrb[5].mxu1 }
 0x344   : > { %v5167_v7 = vadd.f32 %v3777_v19, %v2643_v10 }
 0x345   : > { %v3879_v18 = vadd.f32 %v5166_v17, %v3872_v51 }
 0x346   : > { %v3781_v13 = vpop.f32.mrb[6].mxu1  ;;  %v3880_v26 = vadd.f32 %v5167_v7, %v3872_v51 }
 0x347   : > { %v5168_v20 = vadd.f32 %v3781_v13, %v2647_v11  ;;  %v3783_v21 = vpop.f32.mrb[7].mxu1  ;;  %v3885_v28 = vmax.f32 %v3879_v18, 0.0 }
 0x348   : > { %v5169_v4 = vadd.f32 %v3783_v21, %v2649_v14  ;;  %v3886_v33 = vmax.f32 %v3880_v26, 0.0 }
 0x349   : > { %v3882_v12 = vadd.f32 %v5168_v20, %v3877_v22 }
 0x34a   : > { %v3883_v15 = vadd.f32 %v5169_v4, %v3877_v22  ;;  %v5076_v27 = vpop.f32.mrb[2].mxu1 }
 0x34b   : > { %v3888_v29 = vmax.f32 %v3882_v12, 0.0  ;;  %v3884_v31 = vadd.f32 %v5076_v27, %v3877_v22  ;;  %v3852_v30 = vpop.f32.mrb[3].mxu1 }
 0x34c   : > { %v3889_v37 = vmax.f32 %v3883_v15, 0.0  ;;  %v3881_v38 = vadd.f32 %v3872_v51, %v3852_v30 }
 0x34d   : > { %v5158_v40 = vpack.c.bf16 %v3888_v29, %v3885_v28  ;;  %v3890_v41 = vmax.f32 %v3884_v31, 0.0 }
 0x34e   : > { %v3887_v42 = vmax.f32 %v3881_v38, 0.0  ;;  %v5156_v32 = vpack.c.bf16 %v3889_v37, %v3886_v33 }
 0x350   : > { %v5160_v43 = vpack.c.bf16 %v3890_v41, %v3887_v42  ;;  %5157 = vmatprep.subr.bf16.mxu0 %v5156_v32 }
 0x351   : > { %5159 = vmatpush1.bf16.msra.mxu0 %v5158_v40 }
 0x352   : > { %5161 = vmatprep.subr.bf16.mxu0 %v5160_v43 }
 0x354   : > { %4886 = vmatmul.mubr.msk.f32.vlgmr.msra.gmra.mrb[10].mxu0 %vm2227_vm12, %v3891_v44 }
 0x355   : > { %5163 = vmatpush3.bf16.msra.mxu0 %v5160_v43  ;;  %3981 = vmatprep.mubr.f32.mxu0 %v5508_v1 }
 0x358   : > { %4887 = vmatmul.mubr.msk.f32.gmra.mrb[12].mxu0 %vm2227_vm12, %v3892_v45 }
 0x359   : > { %5081 = vmatprep.mubr.msk.f32.mxu0 %vm2227_vm12, %v3891_v44 }
 0x35c   : > { %5082 = vmatmul.mubr.msk.f32.vlgmr.msra.gmra.mrb[14].mxu0 %vm2227_vm12, %v3892_v45  ;;  %vm4406_vm12 = vcmask 912128  }
 0x427   : > { %v3977_v34 = vpop.f32.mrb[10].mxu0 }
 0x428   : > { %v3978_v47 = vadd.f32 %v3977_v34, %v3898_v46  ;;  %v3979_v48 = vpop.f32.mrb[11].mxu0 }
 0x429   : > { %v3980_v49 = vadd.f32 %v3979_v48, %v3898_v46 }
 0x42a   : > { %v4063_v50 = vsub.f32 0.0, %v3978_v47 }
 0x42b   : > { %v4064_v52 = vsub.f32 0.0, %v3980_v49  ;;  %v3983_v53 = vpop.f32.mrb[12].mxu0 }
 0x42c   : > { %v4069_v1 = vmul.f32 1.442695, %v4063_v50  ;;  %v3984_v54 = vadd.f32 %v3983_v53, %v3903_v39  ;;  %v3985_v55 = vpop.f32.mrb[13].mxu0 }
 0x42d   : > { %v4071_v58 = vmul.f32 1.442695, %v4064_v52  ;;  %v3986_v23 = vadd.f32 %v3985_v55, %v3903_v39 }
 0x42e   : > { %5456 = vpow2.f32 %v4069_v1  ;;  %v4066_v60 = vsub.f32 0.0, %v3984_v54 }
 0x42f   : > { %5458 = vpow2.f32 %v4071_v58  ;;  %v4067_v24 = vsub.f32 0.0, %v3986_v23  ;;  %v5083_v25 = vpop.f32.mrb[14].mxu0 }
 0x430   : > { %v4075_v59 = vmul.f32 1.442695, %v4066_v60  ;;  %v4060_v61 = vadd.f32 %v5083_v25, %v3903_v39  ;;  %v4054_v62 = vpop.f32.mrb[15].mxu0 }
 0x431   : > { %v4077_v63 = vmul.f32 1.442695, %v4067_v24  ;;  %v4055_v0 = vadd.f32 %v4054_v62, %v3898_v46 }
 0x432   : > { %5460 = vpow2.f32 %v4075_v59  ;;  %v4068_v2 = vsub.f32 0.0, %v4060_v61 }
 0x433   : > { %5462 = vpow2.f32 %v4077_v63  ;;  %v4065_v3 = vsub.f32 0.0, %v4055_v0 }
 0x434   : > { %v4079_v5 = vmul.f32 1.442695, %v4068_v2 }
 0x435   : > { %v4073_v6 = vmul.f32 1.442695, %v4065_v3 }
 0x436   : > { %5464 = vpow2.f32 %v4079_v5 }
 0x437   : > { %5466 = vpow2.f32 %v4073_v6  ;;  %v6286_v6 = vld [vmem:[%s5633_s22] sm:$0x77] }
 0x438   : > { %v5457_v8 = vpop.eup %5456 }
 0x439   : > { %v5459_v9 = vpop.eup %5458  ;;  %v4081_v10 = vadd.f32 1.0, %v5457_v8 }
 0x43a   : > { %v4082_v11 = vadd.f32 1.0, %v5459_v9 }
 0x43b   : > { %5468 = vrcp.f32 %v4081_v10 }
 0x43c   : > { %v5461_v14 = vpop.eup %5460  ;;  %5470 = vrcp.f32 %v4082_v11 }
 0x43d   : > { %v5463_v16 = vpop.eup %5462  ;;  %v4084_v17 = vadd.f32 1.0, %v5461_v14 }
 0x43e   : > { %v4085_v19 = vadd.f32 1.0, %v5463_v16  ;;  %v4202_v16 = vcombine.high %v6286_v6, %v6286_v6 }
 0x43f   : > { %5472 = vrcp.f32 %v4084_v17 }
 0x440   : > { %v5465_v7 = vpop.eup %5464  ;;  %5474 = vrcp.f32 %v4085_v19 }
 0x441   : > { %v5467_v51 = vpop.eup %5466  ;;  %v4086_v13 = vadd.f32 1.0, %v5465_v7 }
 0x442   : > { %v4083_v18 = vadd.f32 1.0, %v5467_v51 }
 0x443   : > { %5476 = vrcp.f32 %v4086_v13  ;;  %v6309_v13 = vld [vmem:[%s5633_s22 + $0x8] sm:$0x7]  ;;  %s5523_s22 = smov 82  }
 0x444   : > { %5478 = vrcp.f32 %v4083_v18 }
 0x445   : > { %v6226_v20 = vpop.eup %5468 }
 0x446   : > { %v6228_v21 = vpop.eup %5470  ;;  %v6231_v22 = vsub.f32 1.0, %v6226_v20  ;;  %v4247_v26 = vrot.slane %v6226_v20, 2  ;;  %v4253_v4 = vrot.slane %v6226_v20, 6  ;;  %v4102_v37 = vrot.slane %v6226_v20, 3 }
 0x447   : > { %v6236_v12 = vsub.f32 1.0, %v6228_v21  ;;  %v4105_v42 = vrot.slane %v6228_v21, 3 }
 0x448   : > { %v4149_v15 = vadd.f32 1e-06, %v6231_v22  ;;  %v4259_v27 = vsel %vm4123_vm13, %v4247_v26, %v6226_v20 }
 0x449   : > { %v5473_v28 = vpop.eup %5472  ;;  %v4150_v29 = vadd.f32 1e-06, %v6236_v12  ;;  %v6249_v31 = vsel %vm4262_vm14, %v4259_v27, %v4253_v4  ;;  %v4223_v55 = vcombine.low %v6231_v22, %v6236_v12  ;;  %v4224_v58 = vcombine.high %v6231_v22, %v6236_v12 }
 0x44a   : > { %v5475_v30 = vpop.eup %5474  ;;  %v4103_v33 = vrot.slane %v5473_v28, 3  ;;  %4321 = vst.msk [vmem:[%s6242_s29] sm:$0x7] %vm4319_vm15, %v6249_v31 }
 0x44b   : > { %v4106_v38 = vrot.slane %v5475_v30, 3  ;;  %v4155_v40 = vcombine.low %v4149_v15, %v4150_v29  ;;  %v4156_v41 = vcombine.high %v4149_v15, %v4150_v29  ;;  %v4894_v63 = vrot.slane %v4223_v55, 11 }
 0x44c   : > { %v4104_v32 = vsel %vm4101_vm0, %v4102_v37, %v4103_v33  ;;  %v4228_v0 = vrot.slane %v4224_v58, 7 }
 0x44d   : > { %v5477_v43 = vpop.eup %5476  ;;  %v4892_v44 = vrot.slane %v4155_v40, 11  ;;  %v4160_v45 = vrot.slane %v4156_v41, 7  ;;  %v4107_v46 = vsel %vm4101_vm0, %v4105_v42, %v4106_v38  ;;  %v4114_v34 = vmul.f32 %v6226_v20, %v4104_v32 }
 0x44e   : > { %v6259_v47 = vpop.eup %5478  ;;  %v4109_v48 = vrot.slane %v5477_v43, 3  ;;  %v4115_v50 = vmul.f32 %v6228_v21, %v4107_v46  ;;  %v4229_v11 = vsel %vm6263_vm2, %v4894_v63, %v4228_v0  ;;  %v4274_v40 = vsub.s32 6, %v5903_v35 }
 0x44f   : > { %v4161_v39 = vsel %vm6263_vm2, %v4892_v44, %v4160_v45  ;;  %v6271_v52 = vsub.f32 1.0, %v6259_v47  ;;  %v4108_v53 = vrot.slane %v6259_v47, 3  ;;  %v4289_v43 = vsub.s32 5, %v5903_v35 }
 0x450   : > { %4166 = vrot.lane.b32.xlu0 %v4161_v39, %s5518_s11  ;;  %v4120_v1 = vcombine.low %v4114_v34, %v4115_v50  ;;  %v4121_v54 = vcombine.high %v4114_v34, %v4115_v50  ;;  %v4304_v50 = vsub.s32 4, %v5903_v35 }
 0x451   : > { %v4151_v23 = vadd.f32 1e-06, %v6271_v52  ;;  %v4110_v60 = vsel %vm4101_vm0, %v4108_v53, %v4109_v48  ;;  %v4225_v10 = vcombine.high %v6271_v52, %v6271_v52  ;;  %v4895_v7 = vrot.slane %v6271_v52, 11 }
 0x452   : > { %v4890_v24 = vrot.slane %v4120_v1, 11  ;;  %v4128_v25 = vrot.slane %v4121_v54, 7  ;;  %v4116_v59 = vmul.f32 %v6259_v47, %v4110_v60 }
 0x453   : > { %v4157_v61 = vcombine.high %v4151_v23, %v4151_v23  ;;  %v4893_v3 = vrot.slane %v4151_v23, 11  ;;  %v4232_v19 = vrot.slane %v4225_v10, 7 }
 0x454   : > { %v4129_v62 = vsel %vm6263_vm2, %v4890_v24, %v4128_v25  ;;  %v4122_v2 = vcombine.high %v4116_v59, %v4116_v59  ;;  %v4891_v14 = vrot.slane %v4116_v59, 11 }
 0x455   : > { %4134 = vrot.lane.b32.xlu0 %v4129_v62, %s5518_s11  ;;  %v4164_v5 = vrot.slane %v4157_v61, 7  ;;  %v4233_v51 = vsel %vm6263_vm2, %v4895_v7, %v4232_v19 }
 0x456   : > { %v4132_v9 = vrot.slane %v4122_v2, 7 }
 0x457   : > { %v4165_v8 = vsel %vm6263_vm2, %v4893_v3, %v4164_v5 }
 0x458   : > { %4168 = vrot.lane.b32.xlu1 %v4165_v8, %s5518_s11  ;;  %v4133_v17 = vsel %vm6263_vm2, %v4891_v14, %v4132_v9 }
 0x459   : > { %4234 = vrot.lane.b32.xlu0 %v4229_v11, %s5518_s11 }
 0x45c   : > { %4136 = vrot.lane.b32.xlu1 %v4133_v17, %s5518_s11 }
 0x45d   : > { %4205 = vrot.lane.b32.xlu0 %v4202_v16, %s5516_s18 }
 0x460   : > { %4236 = vrot.lane.b32.xlu1 %v4233_v51, %s5518_s11  ;;  %v4248_v51 = vrot.slane %v6228_v21, 2 }
 0x461   : > { %4334 = vrot.lane.b32.xlu0 %v6249_v31, %s5519_s25 }
 0x464   : > { %4207 = vrot.lane.b32.xlu1 %v6309_v13, %s5516_s18 }
 0x465   : > { %4360 = vrot.lane.b32.xlu0 %v6249_v31, %s5520_s23 }
 0x468   : > { %4203 = vrot.lane.b32.xlu1 %v6286_v6, %s5516_s18 }
 0x46c   : > { %4347 = vrot.lane.b32.xlu1 %v6249_v31, %s5521_s17 }
 0x470   : > { %4373 = vrot.lane.b32.xlu1 %v6249_v31, %s5522_s24 }
 0x4c2   : > { %v4167_v18 = vpop.permute.xlu0 %4166 }
 0x4c3   : > { %v4170_v26 = vrot.slane %v4167_v18, 4 }
 0x4c5   : > { %v4171_v15 = vsel %vm4139_vm3, %v4170_v26, %v4167_v18 }
 0x4c6   : > { %5480 = vrcp.f32 %v4171_v15  ;;  %v4260_v15 = vsel %vm4123_vm13, %v4248_v51, %v6228_v21 }
 0x4c7   : > { %v4135_v4 = vpop.permute.xlu0 %4134 }
 0x4c8   : > { %v4138_v30 = vrot.slane %v4135_v4, 4 }
 0x4ca   : > { %v4169_v27 = vpop.permute.xlu1 %4168  ;;  %v4140_v32 = vsel %vm4139_vm3, %v4138_v30, %v4135_v4  ;;  %v4254_v4 = vrot.slane %v6228_v21, 6 }
 0x4cb   : > { %v4172_v28 = vsel %vm4139_vm3, %v4170_v26, %v4169_v27  ;;  %v4235_v29 = vpop.permute.xlu0 %4234  ;;  %v4144_v25 = vsub.f32 %v6286_v6, %v4140_v32 }
 0x4cc   : > { %v4238_v33 = vrot.slane %v4235_v29, 4  ;;  %5482 = vrcp.f32 %v4172_v28  ;;  %v4264_v28 = vsel %vm4262_vm14, %v4260_v15, %v4254_v4 }
 0x4ce   : > { %v4239_v37 = vsel %vm4139_vm3, %v4238_v33, %v4235_v29  ;;  %v4137_v38 = vpop.permute.xlu1 %4136  ;;  %v4409_v29 = vcombine.low %v6249_v31, %v4264_v28 }
 0x4cf   : > { %v4243_v41 = vmul.f32 %v4239_v37, %v6286_v6  ;;  %v4206_v42 = vpop.permute.xlu0 %4205  ;;  %v4141_v55 = vsel %vm4139_vm3, %v4138_v30, %v4137_v38  ;;  %v4249_v30 = vrot.slane %v6259_v47, 2 }
 0x4d0   : > { %v5481_v24 = vpop.eup %5480  ;;  %v4145_v5 = vsub.f32 %v6309_v13, %v4141_v55 }
 0x4d1   : > { %v4245_v44 = vadd.f32 %v4243_v41, %v4140_v32  ;;  %v4176_v6 = vmul.f32 %v5481_v24, %v4144_v25  ;;  %v4261_v37 = vsel %vm4123_vm13, %v4249_v30, %v6259_v47 }
 0x4d2   : > { %v4237_v45 = vpop.permute.xlu1 %4236 }
 0x4d3   : > { %v4275_v46 = vrot.slane %v4245_v44, %v4274_v40  ;;  %v4240_v34 = vsel %vm4139_vm3, %v4238_v33, %v4237_v45  ;;  %v4335_v48 = vpop.permute.xlu0 %4334  ;;  %v4271_v49 = vrot.slane %v4245_v44, %v5906_v36  ;;  %v4290_v39 = vrot.slane %v4245_v44, %v4289_v43 }
 0x4d4   : > { %v4244_v53 = vmul.f32 %v4240_v34, %v6309_v13  ;;  %4337 = vst.msk [vmem:[%s6242_s29] sm:$0x7] %vm4331_vm4, %v4335_v48  ;;  %v4286_v1 = vrot.slane %v4245_v44, %v5929_v57  ;;  %v4301_v54 = vrot.slane %v4245_v44, %v5926_v56  ;;  %v4305_v61 = vrot.slane %v4245_v44, %v4304_v50 }
 0x4d5   : > { %v4314_v3 = vsel %vm4123_vm13, %v4275_v46, %v4290_v39  ;;  %v4179_v17 = vmax.f32 %v4176_v6, 0.0  ;;  %v4255_v33 = vrot.slane %v6259_v47, 6 }
 0x4d6   : > { %v4246_v58 = vadd.f32 %v4244_v53, %v4141_v55  ;;  %v6337_v23 = vpop.permute.xlu1 %4207  ;;  %v4313_v60 = vsel %vm4123_vm13, %v4271_v49, %v4286_v1  ;;  %v5483_v62 = vpop.eup %5482 }
 0x4d7   : > { %v6343_v35 = vsel %vm1957_vm9, %v4206_v42, %v6337_v23  ;;  %v4316_v59 = vsel %vm4262_vm14, %v4313_v60, %v4301_v54  ;;  %v4178_v10 = vmul.f32 %v5483_v62, %v4145_v5  ;;  %v4361_v19 = vpop.permute.xlu0 %4360  ;;  %v4181_v18 = vmin.f32 %v4179_v17, 1.0 }
 0x4d8   : > { %v4279_v63 = vrot.slane %v4246_v58, %v5906_v36  ;;  %v4294_v0 = vrot.slane %v4246_v58, %v5929_v57  ;;  %v4309_v2 = vrot.slane %v4246_v58, %v5926_v56  ;;  %4323 = vrot.lane.b32.xlu0 %v4316_v59, %s5516_s18  ;;  %4338 = vrot.lane.b32.xlu1 %v4316_v59, %s5523_s22  ;;  %s5530_s22 = smov 50  }
 0x4d9   : > { %v6357_v57 = vsel %vm4262_vm14, %v4314_v3, %v4305_v61  ;;  %v4180_v7 = vmax.f32 %v4178_v10, 0.0  ;;  %v4185_v27 = vcombine.high %v4181_v18, %v4181_v18  ;;  %v6397_v38 = vsel %vm4262_vm14, %v4261_v37, %v4255_v33 }
 0x4da   : > { %v4315_v8 = vsel %vm4123_vm13, %v4279_v63, %v4294_v0  ;;  %v4204_v9 = vpop.permute.xlu1 %4203  ;;  %v4378_v16 = vcombine.low %v4316_v59, %v6357_v57  ;;  %v4215_v49 = vmul.f32 %v6343_v35, %v6236_v12  ;;  %v4216_v61 = vmul.f32 %v6337_v23, %v6271_v52 }
 0x4db   : > { %v6354_v36 = vsel %vm1957_vm9, %v4204_v9, %v4206_v42  ;;  %v6360_v56 = vsel %vm4262_vm14, %v4315_v8, %v4309_v2  ;;  %v4182_v26 = vmin.f32 %v4180_v7, 1.0  ;;  %vm4423_vm13 = vcmask 1043328  }
 0x4dc   : > { %4351 = vrot.lane.b32.xlu0 %v4316_v59, %s5524_s26  ;;  %4364 = vrot.lane.b32.xlu1 %v4316_v59, %s5525_s27  ;;  %v4466_v11 = vcombine.low %v6357_v57, %v6360_v56  ;;  %s6562_s26 = smov 92   ;;  %s6560_s27 = smov 80   ;;  %v4214_v1 = vmul.f32 %v6354_v36, %v6231_v22 }
 0x4de   : > { %v4348_v14 = vpop.permute.xlu1 %4347 }
 0x4df   : > { %4350 = vst.msk [vmem:[%s6242_s29] sm:$0x7] %vm4345_vm5, %v4348_v14 }
 0x4e0   : > { %4379 = vrot.lane.b32.xlu0 %v4378_v16, %s5526_s28  ;;  %4363 = vst.msk [vmem:[%s6242_s29] sm:$0x7] %vm4358_vm6, %v4361_v19  ;;  %4467 = vrot.lane.b32.xlu1 %v4466_v11, %s5527_s19  ;;  %s6561_s28 = smov 84   ;;  %s5535_s19 = smov 66  }
 0x4e2   : > { %v4374_v13 = vpop.permute.xlu1 %4373 }
 0x4e3   : > { %4376 = vst.msk [vmem:[%s6242_s29] sm:$0x7] %vm4371_vm7, %v4374_v13 }
 0x4e4   : > { %4186 = vrot.lane.b32.xlu0 %v4181_v18, %s5516_s18  ;;  %4190 = vrot.lane.b32.xlu1 %v4182_v26, %s5516_s18 }
 0x4e8   : > { %4188 = vrot.lane.b32.xlu0 %v4185_v27, %s5516_s18  ;;  %4437 = vrot.lane.b32.xlu1 %v4264_v28, %s5528_s21  ;;  %s6559_s18 = smov 104  }
 0x4ec   : > { %4441 = vrot.lane.b32.xlu0 %v6357_v57, %s5529_s13  ;;  %4453 = vrot.lane.b32.xlu1 %v6357_v57, %s5530_s22  ;;  %s5537_s13 = smov 76   ;;  %s5538_s22 = smov 62  }
 0x4f0   : > { %4449 = vrot.lane.b32.xlu0 %v4264_v28, %s6562_s26  ;;  %4461 = vrot.lane.b32.xlu1 %v4264_v28, %s6563_s12 }
 0x4f4   : > { %4482 = vrot.lane.b32.xlu0 %v6360_v56, %s5518_s11  ;;  %4410 = vrot.lane.b32.xlu1 %v4409_v29, %s6559_s18  ;;  %s5536_s11 = smov 38   ;;  %s5540_s18 = smov 72  }
 0x4f8   : > { %4490 = vrot.lane.b32.xlu0 %v4264_v28, %s6560_s27  ;;  %4478 = vrot.lane.b32.xlu1 %v4264_v28, %s6561_s28  ;;  %s5542_s27 = smov 58   ;;  %s5543_s28 = smov 100  }
 0x4fc   : > { %4395 = vrot.lane.b32.xlu0 %v6357_v57, %s5535_s19  ;;  %4494 = vrot.lane.b32.xlu1 %v6360_v56, %s5536_s11  ;;  %s5539_s19 = smov 34   ;;  %s5541_s11 = smov 30  }
 0x500   : > { %4504 = vrot.lane.b32.xlu0 %v6397_v38, %s5537_s13  ;;  %4391 = vrot.lane.b32.xlu1 %v6249_v31, %s5512_s30 }
 0x504   : > { %4416 = vrot.lane.b32.xlu0 %v6357_v57, %s5538_s22  ;;  %4508 = vrot.lane.b32.xlu1 %v6360_v56, %s5539_s19  ;;  %s6414_s22 = scalar_lea.vmem %s6558_s10, %s6224_s20 }
 0x508   : > { %4516 = vrot.lane.b32.xlu0 %v6397_v38, %s5540_s18  ;;  %4520 = vrot.lane.b32.xlu1 %v6360_v56, %s5541_s11 }
 0x50c   : > { %4429 = vrot.lane.b32.xlu0 %v6357_v57, %s5542_s27  ;;  %4425 = vrot.lane.b32.xlu1 %v4264_v28, %s5543_s28  ;;  %s6440_s27 = scalar_lea.vmem %s6556_s8, %s6224_s20  ;;  %s6566_s20 = smov 88  }
 0x54a   : > { %v4324_v31 = vpop.permute.xlu0 %4323  ;;  %v4339_v40 = vpop.permute.xlu1 %4338 }
 0x54b   : > { %4326 = vst.msk [vmem:[%s6414_s22] sm:$0x7] %vm4319_vm15, %v4324_v31 }
 0x54c   : > { %4341 = vst.msk [vmem:[%s6414_s22] sm:$0x7] %vm4331_vm4, %v4339_v40 }
 0x54e   : > { %v4352_v41 = vpop.permute.xlu0 %4351  ;;  %v4365_v42 = vpop.permute.xlu1 %4364 }
 0x54f   : > { %4354 = vst.msk [vmem:[%s6414_s22] sm:$0x7] %vm4345_vm5, %v4352_v41 }
 0x550   : > { %4367 = vst.msk [vmem:[%s6414_s22] sm:$0x7] %vm4358_vm6, %v4365_v42 }
 0x552   : > { %v4380_v32 = vpop.permute.xlu0 %4379  ;;  %v4468_v44 = vpop.permute.xlu1 %4467 }
 0x553   : > { %v4381_v43 = vrot.slane %v4380_v32, 4  ;;  %v4469_v54 = vrot.slane %v4468_v44, 4 }
 0x555   : > { %v4383_v45 = vsel %vm4382_vm8, %v4380_v32, %v4381_v43  ;;  %v4471_v24 = vsel %vm4470_vm11, %v4468_v44, %v4469_v54 }
 0x556   : > { %4385 = vst.msk [vmem:[%s6414_s22] sm:$0x7] %vm4371_vm7, %v4383_v45  ;;  %v4187_v46 = vpop.permute.xlu0 %4186  ;;  %v4191_v34 = vpop.permute.xlu1 %4190 }
 0x557   : > { %v4199_v25 = vmul.f32 %v6259_v47, %v4191_v34 }
 0x559   : > { %v4219_v62 = vadd.f32 %v4216_v61, %v4199_v25 }
 0x55a   : > { %v4189_v48 = vpop.permute.xlu0 %4188  ;;  %v4438_v53 = vpop.permute.xlu1 %4437 }
 0x55b   : > { %v4192_v50 = vsel %vm1957_vm9, %v4187_v46, %v4189_v48  ;;  %v4193_v39 = vsel %vm1957_vm9, %v4189_v48, %v4191_v34  ;;  %4440 = vst.msk [vmem:[%s6242_s29 + $0x4] sm:$0x7] %vm4319_vm15, %v4438_v53  ;;  %vm4389_vm9 = vcmask 780928  }
 0x55c   : > { %v4197_v55 = vmul.f32 %v6226_v20, %v4192_v50  ;;  %v4198_v58 = vmul.f32 %v6228_v21, %v4193_v39 }
 0x55e   : > { %v4217_v12 = vadd.f32 %v4214_v1, %v4197_v55  ;;  %v4218_v60 = vadd.f32 %v4215_v49, %v4198_v58  ;;  %v4442_v22 = vpop.permute.xlu0 %4441  ;;  %v4454_v20 = vpop.permute.xlu1 %4453 }
 0x55f   : > { %4444 = vst.msk [vmem:[%s6414_s22 + $0x4] sm:$0x7] %vm4319_vm15, %v4442_v22 }
 0x560   : > { %4456 = vst.msk [vmem:[%s6414_s22 + $0x4] sm:$0x7] %vm4331_vm4, %v4454_v20  ;;  %4342 = vrot.lane.b32.xlu0 %v4217_v12, %s5521_s17  ;;  %4328 = vrot.lane.b32.xlu1 %v4217_v12, %s5519_s25  ;;  %v4400_v21 = vcombine.low %v4217_v12, %v4218_v60  ;;  %s6567_s25 = smov 92   ;;  %s6569_s17 = smov 80  }
 0x561   : > { %4320 = vst.msk [vmem:[%s6440_s27] sm:$0x7] %vm4319_vm15, %v4217_v12 }
 0x562   : > { %4473 = vst.msk [vmem:[%s6414_s22 + $0x4] sm:$0x7] %vm4345_vm5, %v4471_v24  ;;  %v4450_v35 = vpop.permute.xlu0 %4449  ;;  %v4462_v59 = vpop.permute.xlu1 %4461 }
 0x563   : > { %4452 = vst.msk [vmem:[%s6242_s29 + $0x4] sm:$0x7] %vm4331_vm4, %v4450_v35 }
 0x564   : > { %4464 = vst.msk [vmem:[%s6242_s29 + $0x4] sm:$0x7] %vm4345_vm5, %v4462_v59  ;;  %4368 = vrot.lane.b32.xlu0 %v4217_v12, %s5522_s24  ;;  %4355 = vrot.lane.b32.xlu1 %v4217_v12, %s5520_s23  ;;  %s6568_s23 = smov 84   ;;  %s5545_s24 = smov 26  }
 0x566   : > { %v4483_v63 = vpop.permute.xlu0 %4482  ;;  %v4411_v47 = vpop.permute.xlu1 %4410 }
 0x567   : > { %4485 = vst.msk [vmem:[%s6414_s22 + $0x4] sm:$0x7] %vm4358_vm6, %v4483_v63  ;;  %v4412_v3 = vrot.slane %v4411_v47, 4 }
 0x568   : > { %4386 = vrot.lane.b32.xlu0 %v4217_v12, %s5512_s30  ;;  %4499 = vrot.lane.b32.xlu1 %v4219_v62, %s5537_s13  ;;  %s5544_s30 = smov 68  }
 0x569   : > { %v4413_v8 = vsel %vm2180_vm10, %v4411_v47, %v4412_v3 }
 0x56a   : > { %v4491_v0 = vpop.permute.xlu0 %4490  ;;  %v4479_v52 = vpop.permute.xlu1 %4478 }
 0x56b   : > { %4481 = vst.msk [vmem:[%s6242_s29 + $0x4] sm:$0x7] %vm4358_vm6, %v4479_v52 }
 0x56c   : > { %4512 = vrot.lane.b32.xlu1 %v4219_v62, %s5540_s18  ;;  %4433 = vrot.lane.b32.xlu0 %v4218_v60, %s5528_s21  ;;  %4493 = vst.msk [vmem:[%s6242_s29 + $0x4] sm:$0x7] %vm4371_vm7, %v4491_v0  ;;  %s6570_s21 = smov 104  }
 0x56e   : > { %v4396_v23 = vpop.permute.xlu0 %4395  ;;  %v4495_v2 = vpop.permute.xlu1 %4494 }
 0x56f   : > { %4398 = vst.msk [vmem:[%s6414_s22] sm:$0x7] %vm4389_vm9, %v4396_v23 }
 0x570   : > { %4497 = vst.msk [vmem:[%s6414_s22 + $0x4] sm:$0x7] %vm4371_vm7, %v4495_v2  ;;  %4524 = vrot.lane.b32.xlu1 %v4219_v62, %s5544_s30  ;;  %4457 = vrot.lane.b32.xlu0 %v4218_v60, %s6566_s20 }
 0x572   : > { %v4505_v5 = vpop.permute.xlu0 %4504  ;;  %v4392_v6 = vpop.permute.xlu1 %4391 }
 0x573   : > { %4507 = vst.msk [vmem:[%s6242_s29 + $0x4] sm:$0x7] %vm4389_vm9, %v4505_v5  ;;  %4394 = vst.msk [vmem:[%s6242_s29] sm:$0x7] %vm4389_vm9, %v4392_v6 }
 0x574   : > { %4445 = vrot.lane.b32.xlu1 %v4218_v60, %s6567_s25  ;;  %4474 = vrot.lane.b32.xlu0 %v4218_v60, %s6568_s23  ;;  %4415 = vst.msk [vmem:[%s6242_s29] sm:$0x7] %vm4406_vm12, %v4413_v8 }
 0x576   : > { %v4417_v9 = vpop.permute.xlu0 %4416  ;;  %v4509_v10 = vpop.permute.xlu1 %4508 }
 0x577   : > { %4419 = vst.msk [vmem:[%s6414_s22] sm:$0x7] %vm4406_vm12, %v4417_v9 }
 0x578   : > { %4511 = vst.msk [vmem:[%s6414_s22 + $0x4] sm:$0x7] %vm4389_vm9, %v4509_v10  ;;  %4486 = vrot.lane.b32.xlu1 %v4218_v60, %s6569_s17  ;;  %4420 = vrot.lane.b32.xlu0 %v4218_v60, %s5543_s28 }
 0x57a   : > { %v4517_v36 = vpop.permute.xlu0 %4516  ;;  %v4521_v57 = vpop.permute.xlu1 %4520 }
 0x57b   : > { %4519 = vst.msk [vmem:[%s6242_s29 + $0x4] sm:$0x7] %vm4406_vm12, %v4517_v36  ;;  %4523 = vst.msk [vmem:[%s6414_s22 + $0x4] sm:$0x7] %vm4406_vm12, %v4521_v57 }
 0x57c   : > { %4532 = vrot.lane.b32.xlu1 %v6360_v56, %s5545_s24  ;;  %4401 = vrot.lane.b32.xlu0 %v4400_v21, %s6570_s21 }
 0x57e   : > { %v4430_v11 = vpop.permute.xlu0 %4429  ;;  %v4426_v14 = vpop.permute.xlu1 %4425 }
 0x57f   : > { %4432 = vst.msk [vmem:[%s6414_s22] sm:$0x7] %vm4423_vm13, %v4430_v11  ;;  %4428 = vst.msk [vmem:[%s6242_s29] sm:$0x7] %vm4423_vm13, %v4426_v14 }
 0x580   : > { %4528 = vrot.lane.b32.xlu0 %v6397_v38, %s5544_s30 }
 0x5d2   : > { %v4343_v16 = vpop.permute.xlu0 %4342  ;;  %v4329_v17 = vpop.permute.xlu1 %4328 }
 0x5d3   : > { %4332 = vst.msk [vmem:[%s6440_s27] sm:$0x7] %vm4331_vm4, %v4329_v17 }
 0x5d4   : > { %4346 = vst.msk [vmem:[%s6440_s27] sm:$0x7] %vm4345_vm5, %v4343_v16 }
 0x5d6   : > { %v4369_v56 = vpop.permute.xlu0 %4368  ;;  %v4356_v19 = vpop.permute.xlu1 %4355 }
 0x5d7   : > { %4359 = vst.msk [vmem:[%s6440_s27] sm:$0x7] %vm4358_vm6, %v4356_v19 }
 0x5d8   : > { %4372 = vst.msk [vmem:[%s6440_s27] sm:$0x7] %vm4371_vm7, %v4369_v56 }
 0x5da   : > { %v4387_v7 = vpop.permute.xlu0 %4386  ;;  %v4500_v51 = vpop.permute.xlu1 %4499 }
 0x5db   : > { %4390 = vst.msk [vmem:[%s6440_s27] sm:$0x7] %vm4389_vm9, %v4387_v7 }
 0x5de   : > { %v4434_v13 = vpop.permute.xlu0 %4433  ;;  %v4513_v18 = vpop.permute.xlu1 %4512 }
 0x5df   : > { %4436 = vst.msk [vmem:[%s6440_s27 + $0x4] sm:$0x7] %vm4319_vm15, %v4434_v13 }
 0x5e2   : > { %v4458_v26 = vpop.permute.xlu0 %4457  ;;  %v4525_v4 = vpop.permute.xlu1 %4524 }
 0x5e6   : > { %v4475_v15 = vpop.permute.xlu0 %4474  ;;  %v4446_v27 = vpop.permute.xlu1 %4445 }
 0x5e7   : > { %4448 = vst.msk [vmem:[%s6440_s27 + $0x4] sm:$0x7] %vm4331_vm4, %v4446_v27 }
 0x5e8   : > { %4460 = vst.msk [vmem:[%s6440_s27 + $0x4] sm:$0x7] %vm4345_vm5, %v4458_v26 }
 0x5e9   : > { %4477 = vst.msk [vmem:[%s6440_s27 + $0x4] sm:$0x7] %vm4358_vm6, %v4475_v15 }
 0x5ea   : > { %v4421_v28 = vpop.permute.xlu0 %4420  ;;  %v4487_v29 = vpop.permute.xlu1 %4486 }
 0x5eb   : > { %4489 = vst.msk [vmem:[%s6440_s27 + $0x4] sm:$0x7] %vm4371_vm7, %v4487_v29 }
 0x5ec   : > { %4502 = vst.msk [vmem:[%s6440_s27 + $0x4] sm:$0x7] %vm4389_vm9, %v4500_v51 }
 0x5ed   : > { %4515 = vst.msk [vmem:[%s6440_s27 + $0x4] sm:$0x7] %vm4406_vm12, %v4513_v18 }
 0x5ee   : > { %4527 = vst.msk [vmem:[%s6440_s27 + $0x4] sm:$0x7] %vm4423_vm13, %v4525_v4  ;;  %v4402_v30 = vpop.permute.xlu0 %4401  ;;  %v4533_v33 = vpop.permute.xlu1 %4532 }
 0x5ef   : > { %v4403_v37 = vrot.slane %v4402_v30, 4  ;;  %4535 = vst.msk [vmem:[%s6414_s22 + $0x4] sm:$0x7] %vm4423_vm13, %v4533_v33 }
 0x5f1   : > { %v4404_v38 = vsel %vm2180_vm10, %v4402_v30, %v4403_v37 }
 0x5f2   : > { %4407 = vst.msk [vmem:[%s6440_s27] sm:$0x7] %vm4406_vm12, %v4404_v38  ;;  %v4529_v31 = vpop.permute.xlu0 %4528 }
 0x5f3   : > { %4424 = vst.msk [vmem:[%s6440_s27] sm:$0x7] %vm4423_vm13, %v4421_v28  ;;  %4531 = vst.msk [vmem:[%s6242_s29 + $0x4] sm:$0x7] %vm4423_vm13, %v4529_v31 }
 0x5f4 PF: > { %s21_s15 = sadd.s32 1, %s5506_s15   ;;  %s6571_s13 = smov %s5502_s14 }
 0x5f5   : > { %p18_p5 = scmp.ge.s32.totalorder %s21_s15, 4   ;;  %s6572_s14 = smov %s6574_s16 }
 0x5f7   :  { %20 = sbr.rel (!%p18_p5) target bundleno = 2 (0x2), region = 125 }

</bundles_post_ra>
